<compile_context>
chip_gen: v5e
topology: v5e:2x2
jax: 0.10.0
libtpu: 0.0.40
codegen_flags: <defaults>
</compile_context>

<pallas_src>
import functools

import jax
import jax.numpy as jnp
from jax.experimental import pallas as pl
from jax.experimental.pallas import tpu as pltpu


def _round_up(x, m):
    return ((x + m - 1) // m) * m


def _pick_tile(m, cap, granule=16):
    """Row-tile size: multiple of `granule`, <= cap, preferring divisors of the
    padded M (no row-pad copy) and >= 2 grid blocks when possible so
    dimension_semantics=('parallel',) can shard across v7x's 2 TensorCores."""
    m_pad = _round_up(m, granule)
    target = max(granule, min(cap, _round_up(max(m_pad // 2, 1), granule)))
    tm = target
    while m_pad % tm != 0:
        tm -= granule
    if tm * 2 < target:          # divisor too small -> pad rows instead
        tm = target
    return tm, _round_up(m, tm)


# ----------------------------------------------------------------------------
# Fused multi-input matmul kernel:  Y = act( sum_i X_i @ W_i + b )
# ----------------------------------------------------------------------------
def _fused_matmul_kernel(*refs, n_in, relu):
    xs = refs[:n_in]
    ws = refs[n_in:2 * n_in]
    b_ref = refs[2 * n_in]
    o_ref = refs[2 * n_in + 1]
    acc = jnp.dot(xs[0][...], ws[0][...], preferred_element_type=jnp.float32)
    for t in range(1, n_in):
        acc = acc + jnp.dot(xs[t][...], ws[t][...],
                            preferred_element_type=jnp.float32)
    acc = acc + b_ref[...]
    if relu:
        acc = jnp.maximum(acc, 0.0)
    o_ref[...] = acc.astype(o_ref.dtype)


def fused_matmul(xs, ws, b2, relu=False, out_dtype=jnp.bfloat16, tm=1024):
    """Row-tiled, bf16-MXU, f32-accumulate matmul; supports fused channel
    concat (several (X_i, W_i) pairs accumulate into one output)."""
    M = xs[0].shape[0]
    N = ws[0].shape[1]
    Ks = [w.shape[0] for w in ws]
    n_in = len(xs)

    TM, M_pad = _pick_tile(M, tm, 16)            # bf16 sublane granule = 16

    xs_p = []
    for x in xs:
        xb = x.astype(jnp.bfloat16)              # no-op when already bf16
        if M_pad != M:
            xb = jnp.pad(xb, ((0, M_pad - M), (0, 0)))
        xs_p.append(xb)
    ws_b = [w.astype(jnp.bfloat16) for w in ws]  # pre-cast in init -> no-op

    in_specs = ([pl.BlockSpec((TM, K), lambda i: (i, 0)) for K in Ks]
                + [pl.BlockSpec((K, N), lambda i: (0, 0)) for K in Ks]
                + [pl.BlockSpec((1, N), lambda i: (0, 0))])

    flops = 2 * M_pad * sum(Ks) * N
    bytes_accessed = (sum(x.size for x in xs_p) * 2
                      + sum(w.size for w in ws_b) * 2
                      + b2.size * 4 + M_pad * N * jnp.dtype(out_dtype).itemsize)

    out = pl.pallas_call(
        functools.partial(_fused_matmul_kernel, n_in=n_in, relu=relu),
        out_shape=jax.ShapeDtypeStruct((M_pad, N), out_dtype),
        grid=(M_pad // TM,),
        in_specs=in_specs,
        out_specs=pl.BlockSpec((TM, N), lambda i: (i, 0)),
        compiler_params=pltpu.CompilerParams(
            dimension_semantics=("parallel",),
            vmem_limit_bytes=32 * 1024 * 1024),   # fits v7x's 64 MiB VMEM too
        cost_estimate=pl.CostEstimate(flops=flops, transcendentals=0,
                                      bytes_accessed=bytes_accessed),
    )(*xs_p, *ws_b, b2)
    if M_pad != M:
        out = out[:M]
    return out


# ----------------------------------------------------------------------------
# Fused vector-quantization kernel:
#   z = sum_i X_i @ W_i + b        (1x1 quantize-conv + channel concat fused)
#   dist = E2 - 2 z@E (bf16 MXU)   argmin -> onehot -> one f32 MXU gather that
#   returns [codebook row | code index]; per-row commit error as extra column.
# ----------------------------------------------------------------------------
def _vq_fused_kernel(*refs, n_in, dim, n_embed_pad, tm):
    xs = refs[:n_in]
    ws = refs[n_in:2 * n_in]
    b_ref = refs[2 * n_in]
    eb_ref = refs[2 * n_in + 1]        # (dim, nE_pad)  bf16 codebook
    e2_ref = refs[2 * n_in + 2]        # (1, nE_pad)    f32, +1e30 on padded cols
    ea_ref = refs[2 * n_in + 3]        # (dim+1, nE_pad) f32, last row = col idx
    o_ref = refs[2 * n_in + 4]         # (tm, dim+2)    f32 out

    # fused 1x1 conv projection (bf16 MXU, f32 accumulation)
    z = jnp.dot(xs[0][...], ws[0][...], preferred_element_type=jnp.float32)
    for t in range(1, n_in):
        z = z + jnp.dot(xs[t][...], ws[t][...],
                        preferred_element_type=jnp.float32)
    z = z + b_ref[...]                                          # (tm, dim)

    # argmin_j ||z - e_j||^2  ==  argmin_j (||e_j||^2 - 2 z.e_j)
    ze = jnp.dot(z.astype(jnp.bfloat16), eb_ref[...],
                 preferred_element_type=jnp.float32)            # (tm, nE_pad)
    dist = e2_ref[...] - 2.0 * ze
    min_d = jnp.min(dist, axis=1, keepdims=True)
    col = jax.lax.broadcasted_iota(jnp.int32, (tm, n_embed_pad), 1)
    ind = jnp.min(jnp.where(dist == min_d, col, n_embed_pad),
                  axis=1, keepdims=True)                        # first-match
    onehot = (col == ind).astype(jnp.float32)

    # one exact f32 MXU pass gathers the code vector AND the code index
    qa = jax.lax.dot_general(onehot, ea_ref[...], (((1,), (1,)), ((), ())),
                             preferred_element_type=jnp.float32)  # (tm, dim+1)

    d = qa[:, :dim] - z
    err = jnp.sum(d * d, axis=1, keepdims=True)                 # (tm, 1)

    o_ref[:, :dim + 1] = qa
    o_ref[:, dim + 1:] = err


def vector_quantize_fused(xs, ws, b2, codebook, tm=512):
    """xs: list of (M, K_i) activations; ws: list of bf16 (K_i, dim) weights;
    b2: (1, dim) f32 bias; codebook: dict(e_bf16, e2_masked, e_aug).
    Returns (quantize (M, dim) f32, commit_diff scalar, indices (M,) int32)."""
    M = xs[0].shape[0]
    dim = ws[0].shape[1]
    nE_pad = codebook["e_bf16"].shape[1]
    n_in = len(xs)

    # live (TM, nE_pad) temporaries drive vreg/VMEM pressure -> shrink TM for
    # large codebooks (sweep 128-512 on v6e/v7x).
    cap = tm if nE_pad <= 256 else min(tm, 256)
    TM, M_pad = _pick_tile(M, cap, 16)
    nblk = M_pad // TM

    xs_p = []
    for x in xs:
        xb = x.astype(jnp.bfloat16)
        if M_pad != M:
            xb = jnp.pad(xb, ((0, M_pad - M), (0, 0)))
        xs_p.append(xb)
    Ks = [w.shape[0] for w in ws]

    in_specs = ([pl.BlockSpec((TM, K), lambda i: (i, 0)) for K in Ks]
                + [pl.BlockSpec((K, dim), lambda i: (0, 0)) for K in Ks]
                + [pl.BlockSpec((1, dim), lambda i: (0, 0)),
                   pl.BlockSpec((dim, nE_pad), lambda i: (0, 0)),
                   pl.BlockSpec((1, nE_pad), lambda i: (0, 0)),
                   pl.BlockSpec((dim + 1, nE_pad), lambda i: (0, 0))])

    flops = 2 * M_pad * (sum(Ks) * dim + 2 * dim * nE_pad)
    bytes_accessed = (sum(x.size for x in xs_p) * 2
                      + sum(w.size for w in ws) * 2
                      + dim * nE_pad * 2 + (dim + 2) * nE_pad * 4
                      + M_pad * (dim + 2) * 4)

    qa = pl.pallas_call(
        functools.partial(_vq_fused_kernel, n_in=n_in, dim=dim,
                          n_embed_pad=nE_pad, tm=TM),
        out_shape=jax.ShapeDtypeStruct((M_pad, dim + 2), jnp.float32),
        grid=(nblk,),
        in_specs=in_specs,
        out_specs=pl.BlockSpec((TM, dim + 2), lambda i: (i, 0)),
        compiler_params=pltpu.CompilerParams(
            dimension_semantics=("parallel",),
            vmem_limit_bytes=32 * 1024 * 1024),
        cost_estimate=pl.CostEstimate(flops=flops, transcendentals=0,
                                      bytes_accessed=bytes_accessed),
    )(*xs_p, *ws, b2, codebook["e_bf16"], codebook["e2_masked"],
      codebook["e_aug"])

    quant = qa[:M, :dim]                                  # exact codebook rows
    ind = (qa[:M, dim] + 0.5).astype(jnp.int32)           # exact f32 integers
    diff = jnp.sum(qa[:M, dim + 1]) / (M * dim)           # mean((q - z)**2)
    return quant, diff, ind


# ----------------------------------------------------------------------------
# Plain-JAX glue (layout plumbing only)
# ----------------------------------------------------------------------------
def space_to_depth(x, k):
    B, H, W, C = x.shape
    x = x.reshape(B, H // k, k, W // k, k, C)
    x = jnp.transpose(x, (0, 1, 3, 2, 4, 5))
    return x.reshape(B, H // k, W // k, k * k * C)


def depth_to_space(x, k):
    B, Ho, Wo, KKC = x.shape
    C = KKC // (k * k)
    x = x.reshape(B, Ho, Wo, k, k, C)
    x = jnp.transpose(x, (0, 1, 3, 2, 4, 5))
    return x.reshape(B, Ho * k, Wo * k, C)


# ConvTranspose2d(k=4, s=2, p=1) polyphase taps: output parity -> {input shift: tap}
_SHIFTS = [(-1, -1), (-1, 0), (-1, 1),
           (0, -1), (0, 0), (0, 1),
           (1, -1), (1, 0), (1, 1)]
_TAPS = {0: {0: 1, -1: 3}, 1: {1: 0, 0: 2}}


def polyphase_merged_weights(w_raw):
    """w_raw: (C_in, C_out, 4, 4) torch ConvTranspose2d weight.
    Returns 9 per-shift (C_in, 4*C_out) bf16 weights with the 4 output phases
    (di,dj) = (0,0),(0,1),(1,0),(1,1) concatenated along N (lane-dense)."""
    C_in, C_out = w_raw.shape[0], w_raw.shape[1]
    ws = []
    for dh, dw in _SHIFTS:
        blocks = []
        for di in (0, 1):
            for dj in (0, 1):
                kh = _TAPS[di].get(dh)
                kw = _TAPS[dj].get(dw)
                if kh is None or kw is None:
                    blocks.append(jnp.zeros((C_in, C_out), jnp.float32))
                else:
                    blocks.append(w_raw[:, :, kh, kw])
        ws.append(jnp.concatenate(blocks, axis=1).astype(jnp.bfloat16))
    return ws


def conv_transpose_4s2p1(x, shift_ws, b2):
    """Exact ConvTranspose2d(kernel=4, stride=2, padding=1), NHWC input.
    ONE fused matmul: 9 shifted views (split-K accumulate) against phase-
    concatenated weights -> N = 4*C_out lane-dense output, then a
    depth_to_space(2) phase interleave."""
    B, H, W, C = x.shape
    C_out4 = shift_ws[0].shape[1]
    xb = x.astype(jnp.bfloat16)
    xp = jnp.pad(xb, ((0, 0), (1, 1), (1, 1), (0, 0)))
    views = [xp[:, 1 + dh:1 + dh + H, 1 + dw:1 + dw + W, :].reshape(-1, C)
             for dh, dw in _SHIFTS]
    y = fused_matmul(views, shift_ws, b2, out_dtype=jnp.bfloat16)
    return depth_to_space(y.reshape(B, H, W, C_out4), 2)


# ----------------------------------------------------------------------------
# Parameter construction (deterministic, synthetic, kernel-ready layout)
# ----------------------------------------------------------------------------
def init_params(key, cb=16, ct=32, dim=32, n_embed=64):
    ks = jax.random.split(key, 16)

    def nrm(k, shape, scale=0.05):
        return scale * jax.random.normal(k, shape, jnp.float32)

    def bias_row(k, n, scale=0.01):
        return (scale * jax.random.normal(k, (n,), jnp.float32)).reshape(1, n)

    def codebook(k, d, ne):
        e = jax.random.normal(k, (d, ne), jnp.float32)    # torch.randn(dim, n_embed)
        ne_pad = _round_up(ne, 128)
        assert ne_pad < (1 << 24)                         # f32-exact index matmul
        e_pad = jnp.pad(e, ((0, 0), (0, ne_pad - ne)))
        e2 = jnp.sum(e_pad * e_pad, axis=0, keepdims=True)
        e2_masked = jnp.where(jnp.arange(ne_pad)[None, :] < ne,
                              e2, 1e30).astype(jnp.float32)
        idx_row = jnp.arange(ne_pad, dtype=jnp.float32)[None, :]
        return {"e_bf16": e_pad.astype(jnp.bfloat16),
                "e2_masked": e2_masked,
                "e_aug": jnp.concatenate([e_pad, idx_row], axis=0)}

    p = {}
    # encoder_bottom: Conv2d(3, cb, 4, stride=4) + ReLU   (4x4 space_to_depth matmul)
    w = nrm(ks[0], (cb, 3, 4, 4))
    p["enc_b_w"] = w.transpose(2, 3, 1, 0).reshape(4 * 4 * 3, cb).astype(jnp.bfloat16)
    p["enc_b_b"] = bias_row(ks[1], cb)
    # encoder_top: Conv2d(cb, ct, 2, stride=2) + ReLU
    w = nrm(ks[2], (ct, cb, 2, 2))
    p["enc_t_w"] = w.transpose(2, 3, 1, 0).reshape(2 * 2 * cb, ct).astype(jnp.bfloat16)
    p["enc_t_b"] = bias_row(ks[3], ct)
    # quantize_conv_t: Conv2d(ct, dim, 1)   (fused into top VQ kernel)
    w = nrm(ks[4], (dim, ct, 1, 1))
    p["qconv_t_w"] = w[:, :, 0, 0].T.astype(jnp.bfloat16)
    p["qconv_t_b"] = bias_row(ks[5], dim)
    # codebooks
    p["cbook_t"] = codebook(ks[6], dim, n_embed)
    p["cbook_b"] = codebook(ks[7], dim, n_embed)
    # decoder_top: ConvTranspose2d(dim, dim, 2, stride=2)  -> N = 4*dim lane-dense
    w = nrm(ks[8], (dim, dim, 2, 2))
    p["dec_t_w"] = w.transpose(0, 2, 3, 1).reshape(dim, 2 * 2 * dim).astype(jnp.bfloat16)
    p["dec_t_b"] = jnp.tile(bias_row(ks[9], dim), (1, 4))
    # quantize_conv_b: Conv2d(dim + cb, dim, 1)  (split-K, fused into bottom VQ)
    w = nrm(ks[10], (dim, dim + cb, 1, 1))
    wq = w[:, :, 0, 0].T
    p["qconv_b_w0"] = wq[:dim].astype(jnp.bfloat16)
    p["qconv_b_w1"] = wq[dim:].astype(jnp.bfloat16)
    p["qconv_b_b"] = bias_row(ks[11], dim)
    # upsample_t: ConvTranspose2d(dim, dim, 4, stride=2, padding=1) -> merged polyphase
    w = nrm(ks[12], (dim, dim, 4, 4))
    p["ups_w"] = polyphase_merged_weights(w)
    p["ups_b"] = jnp.tile(bias_row(ks[13], dim), (1, 4))
    # decoder_bottom: ConvTranspose2d(2*dim, 3, 4, stride=4)  (split-K)
    w = nrm(ks[14], (2 * dim, 3, 4, 4))
    wd = w.transpose(0, 2, 3, 1).reshape(2 * dim, 4 * 4 * 3)
    p["dec_w0"] = wd[:dim].astype(jnp.bfloat16)
    p["dec_w1"] = wd[dim:].astype(jnp.bfloat16)
    p["dec_b"] = jnp.tile(bias_row(ks[15], 3), (1, 16))
    return p


# ----------------------------------------------------------------------------
# Forward pass (mirrors VectorQuantizedAE2.forward, eval mode)
# ----------------------------------------------------------------------------
def vqae2_forward(params, x_nchw, *, cb=16, ct=32, dim=32):
    B = x_nchw.shape[0]
    x = jnp.transpose(x_nchw, (0, 2, 3, 1))                     # NHWC

    # ---- encode ----
    pch = space_to_depth(x, 4)                                  # (B,H/4,W/4,48)
    Hb, Wb = pch.shape[1], pch.shape[2]
    enc_b_flat = fused_matmul([pch.reshape(-1, pch.shape[-1])],
                              [params["enc_b_w"]], params["enc_b_b"],
                              relu=True)                        # (Mb, cb) bf16
    enc_b = enc_b_flat.reshape(B, Hb, Wb, cb)

    pch = space_to_depth(enc_b, 2)                              # (B,H/8,W/8,4cb)
    Ht, Wt = pch.shape[1], pch.shape[2]
    enc_t = fused_matmul([pch.reshape(-1, pch.shape[-1])],
                         [params["enc_t_w"]], params["enc_t_b"],
                         relu=True)                             # (Mt, ct) bf16

    # quantize_conv_t (1x1) + top VQ, fused
    quant_t_flat, diff_t, id_t = vector_quantize_fused(
        [enc_t], [params["qconv_t_w"]], params["qconv_t_b"], params["cbook_t"])
    quant_t = quant_t_flat.reshape(B, Ht, Wt, dim)
    id_t = id_t.reshape(B, Ht, Wt)

    # decoder_top: ConvTranspose2d(dim, dim, 2, stride=2) -> N=4*dim lane-dense
    dt = fused_matmul([quant_t_flat], [params["dec_t_w"]], params["dec_t_b"])
    dec_t = depth_to_space(dt.reshape(B, Ht, Wt, -1), 2)        # (B,Hb,Wb,dim) bf16

    # cat([dec_t, enc_b]) + quantize_conv_b (1x1) + bottom VQ, fused (split-K)
    quant_b_flat, diff_b, id_b = vector_quantize_fused(
        [dec_t.reshape(-1, dim), enc_b_flat],
        [params["qconv_b_w0"], params["qconv_b_w1"]],
        params["qconv_b_b"], params["cbook_b"])
    quant_b = quant_b_flat.reshape(B, Hb, Wb, dim)
    id_b = id_b.reshape(B, Hb, Wb)

    # ---- decode ----
    ups = conv_transpose_4s2p1(quant_t, params["ups_w"], params["ups_b"])
    # cat([ups, quant_b]) + decoder_bottom fused (split-K accumulate)
    dd = fused_matmul([ups.reshape(-1, dim), quant_b_flat],
                      [params["dec_w0"], params["dec_w1"]],
                      params["dec_b"], out_dtype=jnp.float32)
    x_hat = depth_to_space(dd.reshape(B, Hb, Wb, -1), 4)        # (B,H,W,3)

    return {
        "y_top": jnp.transpose(quant_t, (0, 3, 1, 2)),          # NCHW f32
        "y_bottom": jnp.transpose(quant_b, (0, 3, 1, 2)),       # NCHW f32
        "y_top_indices": id_t,                                  # (B,Ht,Wt) int32
        "y_bottom_indices": id_b,                               # (B,Hb,Wb) int32
        "loss_commit": (diff_t + diff_b).reshape(1),            # shape (1,)
        "x_hat": jnp.transpose(x_hat, (0, 3, 1, 2)),            # NCHW f32
    }


# ----------------------------------------------------------------------------
if __name__ == "__main__":
    key = jax.random.PRNGKey(0)
    k_param, k_input = jax.random.split(key)

    CB, CT, DIM, NEMB = 16, 32, 32, 64
    params = init_params(k_param, cb=CB, ct=CT, dim=DIM, n_embed=NEMB)

    # small input consistent with the module (NCHW, 3 channels)
    x = jax.random.normal(k_input, (2, 3, 32, 32), jnp.float32)

    fwd = jax.jit(functools.partial(vqae2_forward, cb=CB, ct=CT, dim=DIM))
    out = fwd(params, x)
    out = jax.tree_util.tree_map(jax.block_until_ready, out)

    assert out["x_hat"].shape == (2, 3, 32, 32)
    assert out["y_top"].shape == (2, DIM, 4, 4)
    assert out["y_bottom"].shape == (2, DIM, 8, 8)
    assert out["y_top_indices"].shape == (2, 4, 4)
    assert out["y_bottom_indices"].shape == (2, 8, 8)
    assert out["loss_commit"].shape == (1,)
    assert bool(jnp.all(out["y_top_indices"] >= 0)) and bool(
        jnp.all(out["y_top_indices"] < NEMB))
    assert bool(jnp.all(out["y_bottom_indices"] >= 0)) and bool(
        jnp.all(out["y_bottom_indices"] < NEMB))
    assert bool(jnp.all(jnp.isfinite(out["x_hat"])))
    assert bool(jnp.all(out["loss_commit"] >= 0))
    print("KERNEL_OK")
</pallas_src>

<mosaic_0001>
module attributes {stable_mosaic.version = 11 : i64} {
  func.func @_fused_matmul_kernel(%arg0: i32, %arg1: memref<64x48xbf16, #tpu.memory_space<vmem>>, %arg2: memref<48x16xbf16, #tpu.memory_space<vmem>>, %arg3: memref<1x16xf32, #tpu.memory_space<vmem>>, %arg4: memref<64x16xbf16, #tpu.memory_space<vmem>>) attributes {dimension_semantics = [#tpu.dimension_semantics<parallel>], iteration_bounds = array<i64: 2>, scalar_prefetch = 0 : i64, scratch_operands = 0 : i64, tpu.core_type = #tpu.core_type<tc>, window_params = [{transform_indices = @transform_0, window_bounds = array<i64: 64, 48>}, {pipeline_mode = #tpu.pipeline_mode<synchronous>, transform_indices = @transform_1, window_bounds = array<i64: 48, 16>}, {pipeline_mode = #tpu.pipeline_mode<synchronous>, transform_indices = @transform_2, window_bounds = array<i64: 1, 16>}, {transform_indices = @transform_3, window_bounds = array<i64: 64, 16>}]} {
    %c0 = arith.constant 0 : index
    %c0_0 = arith.constant 0 : index
    %0 = vector.load %arg1[%c0, %c0_0] : memref<64x48xbf16, #tpu.memory_space<vmem>>, vector<64x48xbf16>
    %c0_1 = arith.constant 0 : index
    %c0_2 = arith.constant 0 : index
    %1 = vector.load %arg2[%c0_1, %c0_2] : memref<48x16xbf16, #tpu.memory_space<vmem>>, vector<48x16xbf16>
    %cst = arith.constant dense<0.000000e+00> : vector<64x16xf32>
    %2 = tpu.matmul %0, %1, %cst {dimension_numbers = #tpu.dot_dimension_numbers<[1], [0], [0], [1], [0, 0, 1, 1], [], []>} : vector<64x48xbf16>, vector<48x16xbf16>, vector<64x16xf32> -> vector<64x16xf32>
    %c0_3 = arith.constant 0 : index
    %c0_4 = arith.constant 0 : index
    %3 = vector.load %arg3[%c0_3, %c0_4] : memref<1x16xf32, #tpu.memory_space<vmem>>, vector<1x16xf32>
    %4 = vector.broadcast %3 : vector<1x16xf32> to vector<64x16xf32>
    %5 = arith.addf %2, %4 : vector<64x16xf32>
    %cst_5 = arith.constant 0.000000e+00 : f32
    %6 = vector.broadcast %cst_5 : f32 to vector<64x16xf32>
    %7 = arith.maximumf %5, %6 : vector<64x16xf32>
    %8 = arith.truncf %7 : vector<64x16xf32> to vector<64x16xbf16>
    %c0_6 = arith.constant 0 : index
    %c0_7 = arith.constant 0 : index
    %9 = vector.load %arg4[%c0_6, %c0_7] : memref<64x16xbf16, #tpu.memory_space<vmem>>, vector<64x16xbf16>
    tpu.vector_store %arg4[%c0_6, %c0_7], %8 {strides = array<i32>} : memref<64x16xbf16, #tpu.memory_space<vmem>>, vector<64x16xbf16>,
    return
  }
  func.func @transform_0(%arg0: i32) -> (i32, i32) {
    %c0_i32 = arith.constant 0 : i32
    %c0_i32_0 = arith.constant 0 : i32
    return %arg0, %c0_i32 : i32, i32
  }
  func.func @transform_1(%arg0: i32) -> (i32, i32) {
    %c0_i32 = arith.constant 0 : i32
    %c0_i32_0 = arith.constant 0 : i32
    %c0_i32_1 = arith.constant 0 : i32
    return %c0_i32, %c0_i32_0 : i32, i32
  }
  func.func @transform_2(%arg0: i32) -> (i32, i32) {
    %c0_i32 = arith.constant 0 : i32
    %c0_i32_0 = arith.constant 0 : i32
    %c0_i32_1 = arith.constant 0 : i32
    return %c0_i32, %c0_i32_0 : i32, i32
  }
  func.func @transform_3(%arg0: i32) -> (i32, i32) {
    %c0_i32 = arith.constant 0 : i32
    %c0_i32_0 = arith.constant 0 : i32
    return %arg0, %c0_i32 : i32, i32
  }
}

module attributes {stable_mosaic.version = 11 : i64} {
  func.func @_fused_matmul_kernel(%arg0: i32, %arg1: memref<16x64xbf16, #tpu.memory_space<vmem>>, %arg2: memref<64x32xbf16, #tpu.memory_space<vmem>>, %arg3: memref<1x32xf32, #tpu.memory_space<vmem>>, %arg4: memref<16x32xbf16, #tpu.memory_space<vmem>>) attributes {dimension_semantics = [#tpu.dimension_semantics<parallel>], iteration_bounds = array<i64: 2>, scalar_prefetch = 0 : i64, scratch_operands = 0 : i64, tpu.core_type = #tpu.core_type<tc>, window_params = [{transform_indices = @transform_0, window_bounds = array<i64: 16, 64>}, {pipeline_mode = #tpu.pipeline_mode<synchronous>, transform_indices = @transform_1, window_bounds = array<i64: 64, 32>}, {pipeline_mode = #tpu.pipeline_mode<synchronous>, transform_indices = @transform_2, window_bounds = array<i64: 1, 32>}, {transform_indices = @transform_3, window_bounds = array<i64: 16, 32>}]} {
    %c0 = arith.constant 0 : index
    %c0_0 = arith.constant 0 : index
    %0 = vector.load %arg1[%c0, %c0_0] : memref<16x64xbf16, #tpu.memory_space<vmem>>, vector<16x64xbf16>
    %c0_1 = arith.constant 0 : index
    %c0_2 = arith.constant 0 : index
    %1 = vector.load %arg2[%c0_1, %c0_2] : memref<64x32xbf16, #tpu.memory_space<vmem>>, vector<64x32xbf16>
    %cst = arith.constant dense<0.000000e+00> : vector<16x32xf32>
    %2 = tpu.matmul %0, %1, %cst {dimension_numbers = #tpu.dot_dimension_numbers<[1], [0], [0], [1], [0, 0, 1, 1], [], []>} : vector<16x64xbf16>, vector<64x32xbf16>, vector<16x32xf32> -> vector<16x32xf32>
    %c0_3 = arith.constant 0 : index
    %c0_4 = arith.constant 0 : index
    %3 = vector.load %arg3[%c0_3, %c0_4] : memref<1x32xf32, #tpu.memory_space<vmem>>, vector<1x32xf32>
    %4 = vector.broadcast %3 : vector<1x32xf32> to vector<16x32xf32>
    %5 = arith.addf %2, %4 : vector<16x32xf32>
    %cst_5 = arith.constant 0.000000e+00 : f32
    %6 = vector.broadcast %cst_5 : f32 to vector<16x32xf32>
    %7 = arith.maximumf %5, %6 : vector<16x32xf32>
    %8 = arith.truncf %7 : vector<16x32xf32> to vector<16x32xbf16>
    %c0_6 = arith.constant 0 : index
    %c0_7 = arith.constant 0 : index
    %9 = vector.load %arg4[%c0_6, %c0_7] : memref<16x32xbf16, #tpu.memory_space<vmem>>, vector<16x32xbf16>
    tpu.vector_store %arg4[%c0_6, %c0_7], %8 {strides = array<i32>} : memref<16x32xbf16, #tpu.memory_space<vmem>>, vector<16x32xbf16>,
    return
  }
  func.func @transform_0(%arg0: i32) -> (i32, i32) {
    %c0_i32 = arith.constant 0 : i32
    %c0_i32_0 = arith.constant 0 : i32
    return %arg0, %c0_i32 : i32, i32
  }
  func.func @transform_1(%arg0: i32) -> (i32, i32) {
    %c0_i32 = arith.constant 0 : i32
    %c0_i32_0 = arith.constant 0 : i32
    %c0_i32_1 = arith.constant 0 : i32
    return %c0_i32, %c0_i32_0 : i32, i32
  }
  func.func @transform_2(%arg0: i32) -> (i32, i32) {
    %c0_i32 = arith.constant 0 : i32
    %c0_i32_0 = arith.constant 0 : i32
    %c0_i32_1 = arith.constant 0 : i32
    return %c0_i32, %c0_i32_0 : i32, i32
  }
  func.func @transform_3(%arg0: i32) -> (i32, i32) {
    %c0_i32 = arith.constant 0 : i32
    %c0_i32_0 = arith.constant 0 : i32
    return %arg0, %c0_i32 : i32, i32
  }
}

module attributes {stable_mosaic.version = 11 : i64} {
  func.func @_vq_fused_kernel(%arg0: i32, %arg1: memref<16x32xbf16, #tpu.memory_space<vmem>>, %arg2: memref<32x32xbf16, #tpu.memory_space<vmem>>, %arg3: memref<1x32xf32, #tpu.memory_space<vmem>>, %arg4: memref<32x128xbf16, #tpu.memory_space<vmem>>, %arg5: memref<1x128xf32, #tpu.memory_space<vmem>>, %arg6: memref<33x128xf32, #tpu.memory_space<vmem>>, %arg7: memref<16x34xf32, #tpu.memory_space<vmem>>) attributes {dimension_semantics = [#tpu.dimension_semantics<parallel>], iteration_bounds = array<i64: 2>, scalar_prefetch = 0 : i64, scratch_operands = 0 : i64, tpu.core_type = #tpu.core_type<tc>, window_params = [{transform_indices = @transform_0, window_bounds = array<i64: 16, 32>}, {pipeline_mode = #tpu.pipeline_mode<synchronous>, transform_indices = @transform_1, window_bounds = array<i64: 32, 32>}, {pipeline_mode = #tpu.pipeline_mode<synchronous>, transform_indices = @transform_2, window_bounds = array<i64: 1, 32>}, {pipeline_mode = #tpu.pipeline_mode<synchronous>, transform_indices = @transform_3, window_bounds = array<i64: 32, 128>}, {pipeline_mode = #tpu.pipeline_mode<synchronous>, transform_indices = @transform_4, window_bounds = array<i64: 1, 128>}, {pipeline_mode = #tpu.pipeline_mode<synchronous>, transform_indices = @transform_5, window_bounds = array<i64: 33, 128>}, {transform_indices = @transform_6, window_bounds = array<i64: 16, 34>}]} {
    %c0 = arith.constant 0 : index
    %c0_0 = arith.constant 0 : index
    %0 = vector.load %arg1[%c0, %c0_0] : memref<16x32xbf16, #tpu.memory_space<vmem>>, vector<16x32xbf16>
    %c0_1 = arith.constant 0 : index
    %c0_2 = arith.constant 0 : index
    %1 = vector.load %arg2[%c0_1, %c0_2] : memref<32x32xbf16, #tpu.memory_space<vmem>>, vector<32x32xbf16>
    %cst = arith.constant dense<0.000000e+00> : vector<16x32xf32>
    %2 = tpu.matmul %0, %1, %cst {dimension_numbers = #tpu.dot_dimension_numbers<[1], [0], [0], [1], [0, 0, 1, 1], [], []>} : vector<16x32xbf16>, vector<32x32xbf16>, vector<16x32xf32> -> vector<16x32xf32>
    %c0_3 = arith.constant 0 : index
    %c0_4 = arith.constant 0 : index
    %3 = vector.load %arg3[%c0_3, %c0_4] : memref<1x32xf32, #tpu.memory_space<vmem>>, vector<1x32xf32>
    %4 = vector.broadcast %3 : vector<1x32xf32> to vector<16x32xf32>
    %5 = arith.addf %2, %4 : vector<16x32xf32>
    %6 = arith.truncf %5 : vector<16x32xf32> to vector<16x32xbf16>
    %c0_5 = arith.constant 0 : index
    %c0_6 = arith.constant 0 : index
    %7 = vector.load %arg4[%c0_5, %c0_6] : memref<32x128xbf16, #tpu.memory_space<vmem>>, vector<32x128xbf16>
    %cst_7 = arith.constant dense<0.000000e+00> : vector<16x128xf32>
    %8 = tpu.matmul %6, %7, %cst_7 {dimension_numbers = #tpu.dot_dimension_numbers<[1], [0], [0], [1], [0, 0, 1, 1], [], []>} : vector<16x32xbf16>, vector<32x128xbf16>, vector<16x128xf32> -> vector<16x128xf32>
    %c0_8 = arith.constant 0 : index
    %c0_9 = arith.constant 0 : index
    %9 = vector.load %arg5[%c0_8, %c0_9] : memref<1x128xf32, #tpu.memory_space<vmem>>, vector<1x128xf32>
    %cst_10 = arith.constant 2.000000e+00 : f32
    %10 = vector.broadcast %cst_10 : f32 to vector<16x128xf32>
    %11 = arith.mulf %10, %8 : vector<16x128xf32>
    %12 = vector.broadcast %9 : vector<1x128xf32> to vector<16x128xf32>
    %13 = arith.subf %12, %11 : vector<16x128xf32>
    %cst_11 = arith.constant dense<0x7F800000> : vector<16xf32>
    %14 = vector.multi_reduction <minimumf>, %13, %cst_11 [1] : vector<16x128xf32> to vector<16xf32>
    %15 = vector.shape_cast %14 : vector<16xf32> to vector<16x1xf32>
    %16 = tpu.iota {dimensions = array<i32: 1>} : vector<16x128xi32>
    %17 = vector.broadcast %15 : vector<16x1xf32> to vector<16x128xf32>
    %18 = arith.cmpf oeq, %13, %17 : vector<16x128xf32>
    %c128_i32 = arith.constant 128 : i32
    %19 = vector.broadcast %c128_i32 : i32 to vector<16x128xi32>
    %20 = arith.select %18, %16, %19 : vector<16x128xi1>, vector<16x128xi32>
    %cst_12 = arith.constant dense<2147483647> : vector<16xi32>
    %21 = vector.multi_reduction <minsi>, %20, %cst_12 [1] : vector<16x128xi32> to vector<16xi32>
    %22 = vector.shape_cast %21 : vector<16xi32> to vector<16x1xi32>
    %23 = vector.broadcast %22 : vector<16x1xi32> to vector<16x128xi32>
    %24 = arith.cmpi eq, %16, %23 : vector<16x128xi32>
    %25 = arith.extui %24 : vector<16x128xi1> to vector<16x128xi32>
    %26 = arith.sitofp %25 : vector<16x128xi32> to vector<16x128xf32>
    %c0_13 = arith.constant 0 : index
    %c0_14 = arith.constant 0 : index
    %27 = vector.load %arg6[%c0_13, %c0_14] : memref<33x128xf32, #tpu.memory_space<vmem>>, vector<33x128xf32>
    %cst_15 = arith.constant dense<0.000000e+00> : vector<16x33xf32>
    %28 = tpu.matmul %26, %27, %cst_15 {dimension_numbers = #tpu.dot_dimension_numbers<[1], [1], [0], [0], [0, 0, 1, 0], [], []>} : vector<16x128xf32>, vector<33x128xf32>, vector<16x33xf32> -> vector<16x33xf32>
    %29 = vector.extract_strided_slice %28 {offsets = [0, 0], sizes = [16, 32], strides = [1, 1]} : vector<16x33xf32> to vector<16x32xf32>
    %30 = arith.subf %29, %5 : vector<16x32xf32>
    %31 = arith.mulf %30, %30 : vector<16x32xf32>
    %cst_16 = arith.constant dense<0.000000e+00> : vector<16xf32>
    %32 = vector.multi_reduction <add>, %31, %cst_16 [1] : vector<16x32xf32> to vector<16xf32>
    %33 = vector.shape_cast %32 : vector<16xf32> to vector<16x1xf32>
    %c0_17 = arith.constant 0 : index
    %c0_18 = arith.constant 0 : index
    %34 = vector.load %arg7[%c0_17, %c0_18] : memref<16x34xf32, #tpu.memory_space<vmem>>, vector<16x33xf32>
    tpu.vector_store %arg7[%c0_17, %c0_18], %28 {strides = array<i32>} : memref<16x34xf32, #tpu.memory_space<vmem>>, vector<16x33xf32>,
    %c0_19 = arith.constant 0 : index
    %c33 = arith.constant 33 : index
    %35 = vector.load %arg7[%c0_19, %c33] : memref<16x34xf32, #tpu.memory_space<vmem>>, vector<16x1xf32>
    tpu.vector_store %arg7[%c0_19, %c33], %33 {strides = array<i32>} : memref<16x34xf32, #tpu.memory_space<vmem>>, vector<16x1xf32>,
    return
  }
  func.func @transform_0(%arg0: i32) -> (i32, i32) {
    %c0_i32 = arith.constant 0 : i32
    %c0_i32_0 = arith.constant 0 : i32
    return %arg0, %c0_i32 : i32, i32
  }
  func.func @transform_1(%arg0: i32) -> (i32, i32) {
    %c0_i32 = arith.constant 0 : i32
    %c0_i32_0 = arith.constant 0 : i32
    %c0_i32_1 = arith.constant 0 : i32
    return %c0_i32, %c0_i32_0 : i32, i32
  }
  func.func @transform_2(%arg0: i32) -> (i32, i32) {
    %c0_i32 = arith.constant 0 : i32
    %c0_i32_0 = arith.constant 0 : i32
    %c0_i32_1 = arith.constant 0 : i32
    return %c0_i32, %c0_i32_0 : i32, i32
  }
  func.func @transform_3(%arg0: i32) -> (i32, i32) {
    %c0_i32 = arith.constant 0 : i32
    %c0_i32_0 = arith.constant 0 : i32
    %c0_i32_1 = arith.constant 0 : i32
    return %c0_i32, %c0_i32_0 : i32, i32
  }
  func.func @transform_4(%arg0: i32) -> (i32, i32) {
    %c0_i32 = arith.constant 0 : i32
    %c0_i32_0 = arith.constant 0 : i32
    %c0_i32_1 = arith.constant 0 : i32
    return %c0_i32, %c0_i32_0 : i32, i32
  }
  func.func @transform_5(%arg0: i32) -> (i32, i32) {
    %c0_i32 = arith.constant 0 : i32
    %c0_i32_0 = arith.constant 0 : i32
    %c0_i32_1 = arith.constant 0 : i32
    return %c0_i32, %c0_i32_0 : i32, i32
  }
  func.func @transform_6(%arg0: i32) -> (i32, i32) {
    %c0_i32 = arith.constant 0 : i32
    %c0_i32_0 = arith.constant 0 : i32
    return %arg0, %c0_i32 : i32, i32
  }
}

module attributes {stable_mosaic.version = 11 : i64} {
  func.func @_fused_matmul_kernel(%arg0: i32, %arg1: memref<16x32xbf16, #tpu.memory_space<vmem>>, %arg2: memref<16x32xbf16, #tpu.memory_space<vmem>>, %arg3: memref<16x32xbf16, #tpu.memory_space<vmem>>, %arg4: memref<16x32xbf16, #tpu.memory_space<vmem>>, %arg5: memref<16x32xbf16, #tpu.memory_space<vmem>>, %arg6: memref<16x32xbf16, #tpu.memory_space<vmem>>, %arg7: memref<16x32xbf16, #tpu.memory_space<vmem>>, %arg8: memref<16x32xbf16, #tpu.memory_space<vmem>>, %arg9: memref<16x32xbf16, #tpu.memory_space<vmem>>, %arg10: memref<32x128xbf16, #tpu.memory_space<vmem>>, %arg11: memref<32x128xbf16, #tpu.memory_space<vmem>>, %arg12: memref<32x128xbf16, #tpu.memory_space<vmem>>, %arg13: memref<32x128xbf16, #tpu.memory_space<vmem>>, %arg14: memref<32x128xbf16, #tpu.memory_space<vmem>>, %arg15: memref<32x128xbf16, #tpu.memory_space<vmem>>, %arg16: memref<32x128xbf16, #tpu.memory_space<vmem>>, %arg17: memref<32x128xbf16, #tpu.memory_space<vmem>>, %arg18: memref<32x128xbf16, #tpu.memory_space<vmem>>, %arg19: memref<1x128xf32, #tpu.memory_space<vmem>>, %arg20: memref<16x128xbf16, #tpu.memory_space<vmem>>) attributes {dimension_semantics = [#tpu.dimension_semantics<parallel>], iteration_bounds = array<i64: 2>, scalar_prefetch = 0 : i64, scratch_operands = 0 : i64, tpu.core_type = #tpu.core_type<tc>, window_params = [{transform_indices = @transform_0, window_bounds = array<i64: 16, 32>}, {transform_indices = @transform_1, window_bounds = array<i64: 16, 32>}, {transform_indices = @transform_2, window_bounds = array<i64: 16, 32>}, {transform_indices = @transform_3, window_bounds = array<i64: 16, 32>}, {transform_indices = @transform_4, window_bounds = array<i64: 16, 32>}, {transform_indices = @transform_5, window_bounds = array<i64: 16, 32>}, {transform_indices = @transform_6, window_bounds = array<i64: 16, 32>}, {transform_indices = @transform_7, window_bounds = array<i64: 16, 32>}, {transform_indices = @transform_8, window_bounds = array<i64: 16, 32>}, {pipeline_mode = #tpu.pipeline_mode<synchronous>, transform_indices = @transform_9, window_bounds = array<i64: 32, 128>}, {pipeline_mode = #tpu.pipeline_mode<synchronous>, transform_indices = @transform_10, window_bounds = array<i64: 32, 128>}, {pipeline_mode = #tpu.pipeline_mode<synchronous>, transform_indices = @transform_11, window_bounds = array<i64: 32, 128>}, {pipeline_mode = #tpu.pipeline_mode<synchronous>, transform_indices = @transform_12, window_bounds = array<i64: 32, 128>}, {pipeline_mode = #tpu.pipeline_mode<synchronous>, transform_indices = @transform_13, window_bounds = array<i64: 32, 128>}, {pipeline_mode = #tpu.pipeline_mode<synchronous>, transform_indices = @transform_14, window_bounds = array<i64: 32, 128>}, {pipeline_mode = #tpu.pipeline_mode<synchronous>, transform_indices = @transform_15, window_bounds = array<i64: 32, 128>}, {pipeline_mode = #tpu.pipeline_mode<synchronous>, transform_indices = @transform_16, window_bounds = array<i64: 32, 128>}, {pipeline_mode = #tpu.pipeline_mode<synchronous>, transform_indices = @transform_17, window_bounds = array<i64: 32, 128>}, {pipeline_mode = #tpu.pipeline_mode<synchronous>, transform_indices = @transform_18, window_bounds = array<i64: 1, 128>}, {transform_indices = @transform_19, window_bounds = array<i64: 16, 128>}]} {
    %c0 = arith.constant 0 : index
    %c0_0 = arith.constant 0 : index
    %0 = vector.load %arg1[%c0, %c0_0] : memref<16x32xbf16, #tpu.memory_space<vmem>>, vector<16x32xbf16>
    %c0_1 = arith.constant 0 : index
    %c0_2 = arith.constant 0 : index
    %1 = vector.load %arg10[%c0_1, %c0_2] : memref<32x128xbf16, #tpu.memory_space<vmem>>, vector<32x128xbf16>
    %cst = arith.constant dense<0.000000e+00> : vector<16x128xf32>
    %2 = tpu.matmul %0, %1, %cst {dimension_numbers = #tpu.dot_dimension_numbers<[1], [0], [0], [1], [0, 0, 1, 1], [], []>} : vector<16x32xbf16>, vector<32x128xbf16>, vector<16x128xf32> -> vector<16x128xf32>
    %c0_3 = arith.constant 0 : index
    %c0_4 = arith.constant 0 : index
    %3 = vector.load %arg2[%c0_3, %c0_4] : memref<16x32xbf16, #tpu.memory_space<vmem>>, vector<16x32xbf16>
    %c0_5 = arith.constant 0 : index
    %c0_6 = arith.constant 0 : index
    %4 = vector.load %arg11[%c0_5, %c0_6] : memref<32x128xbf16, #tpu.memory_space<vmem>>, vector<32x128xbf16>
    %cst_7 = arith.constant dense<0.000000e+00> : vector<16x128xf32>
    %5 = tpu.matmul %3, %4, %cst_7 {dimension_numbers = #tpu.dot_dimension_numbers<[1], [0], [0], [1], [0, 0, 1, 1], [], []>} : vector<16x32xbf16>, vector<32x128xbf16>, vector<16x128xf32> -> vector<16x128xf32>
    %6 = arith.addf %2, %5 : vector<16x128xf32>
    %c0_8 = arith.constant 0 : index
    %c0_9 = arith.constant 0 : index
    %7 = vector.load %arg3[%c0_8, %c0_9] : memref<16x32xbf16, #tpu.memory_space<vmem>>, vector<16x32xbf16>
    %c0_10 = arith.constant 0 : index
    %c0_11 = arith.constant 0 : index
    %8 = vector.load %arg12[%c0_10, %c0_11] : memref<32x128xbf16, #tpu.memory_space<vmem>>, vector<32x128xbf16>
    %cst_12 = arith.constant dense<0.000000e+00> : vector<16x128xf32>
    %9 = tpu.matmul %7, %8, %cst_12 {dimension_numbers = #tpu.dot_dimension_numbers<[1], [0], [0], [1], [0, 0, 1, 1], [], []>} : vector<16x32xbf16>, vector<32x128xbf16>, vector<16x128xf32> -> vector<16x128xf32>
    %10 = arith.addf %6, %9 : vector<16x128xf32>
    %c0_13 = arith.constant 0 : index
    %c0_14 = arith.constant 0 : index
    %11 = vector.load %arg4[%c0_13, %c0_14] : memref<16x32xbf16, #tpu.memory_space<vmem>>, vector<16x32xbf16>
    %c0_15 = arith.constant 0 : index
    %c0_16 = arith.constant 0 : index
    %12 = vector.load %arg13[%c0_15, %c0_16] : memref<32x128xbf16, #tpu.memory_space<vmem>>, vector<32x128xbf16>
    %cst_17 = arith.constant dense<0.000000e+00> : vector<16x128xf32>
    %13 = tpu.matmul %11, %12, %cst_17 {dimension_numbers = #tpu.dot_dimension_numbers<[1], [0], [0], [1], [0, 0, 1, 1], [], []>} : vector<16x32xbf16>, vector<32x128xbf16>, vector<16x128xf32> -> vector<16x128xf32>
    %14 = arith.addf %10, %13 : vector<16x128xf32>
    %c0_18 = arith.constant 0 : index
    %c0_19 = arith.constant 0 : index
    %15 = vector.load %arg5[%c0_18, %c0_19] : memref<16x32xbf16, #tpu.memory_space<vmem>>, vector<16x32xbf16>
    %c0_20 = arith.constant 0 : index
    %c0_21 = arith.constant 0 : index
    %16 = vector.load %arg14[%c0_20, %c0_21] : memref<32x128xbf16, #tpu.memory_space<vmem>>, vector<32x128xbf16>
    %cst_22 = arith.constant dense<0.000000e+00> : vector<16x128xf32>
    %17 = tpu.matmul %15, %16, %cst_22 {dimension_numbers = #tpu.dot_dimension_numbers<[1], [0], [0], [1], [0, 0, 1, 1], [], []>} : vector<16x32xbf16>, vector<32x128xbf16>, vector<16x128xf32> -> vector<16x128xf32>
    %18 = arith.addf %14, %17 : vector<16x128xf32>
    %c0_23 = arith.constant 0 : index
    %c0_24 = arith.constant 0 : index
    %19 = vector.load %arg6[%c0_23, %c0_24] : memref<16x32xbf16, #tpu.memory_space<vmem>>, vector<16x32xbf16>
    %c0_25 = arith.constant 0 : index
    %c0_26 = arith.constant 0 : index
    %20 = vector.load %arg15[%c0_25, %c0_26] : memref<32x128xbf16, #tpu.memory_space<vmem>>, vector<32x128xbf16>
    %cst_27 = arith.constant dense<0.000000e+00> : vector<16x128xf32>
    %21 = tpu.matmul %19, %20, %cst_27 {dimension_numbers = #tpu.dot_dimension_numbers<[1], [0], [0], [1], [0, 0, 1, 1], [], []>} : vector<16x32xbf16>, vector<32x128xbf16>, vector<16x128xf32> -> vector<16x128xf32>
    %22 = arith.addf %18, %21 : vector<16x128xf32>
    %c0_28 = arith.constant 0 : index
    %c0_29 = arith.constant 0 : index
    %23 = vector.load %arg7[%c0_28, %c0_29] : memref<16x32xbf16, #tpu.memory_space<vmem>>, vector<16x32xbf16>
    %c0_30 = arith.constant 0 : index
    %c0_31 = arith.constant 0 : index
    %24 = vector.load %arg16[%c0_30, %c0_31] : memref<32x128xbf16, #tpu.memory_space<vmem>>, vector<32x128xbf16>
    %cst_32 = arith.constant dense<0.000000e+00> : vector<16x128xf32>
    %25 = tpu.matmul %23, %24, %cst_32 {dimension_numbers = #tpu.dot_dimension_numbers<[1], [0], [0], [1], [0, 0, 1, 1], [], []>} : vector<16x32xbf16>, vector<32x128xbf16>, vector<16x128xf32> -> vector<16x128xf32>
    %26 = arith.addf %22, %25 : vector<16x128xf32>
    %c0_33 = arith.constant 0 : index
    %c0_34 = arith.constant 0 : index
    %27 = vector.load %arg8[%c0_33, %c0_34] : memref<16x32xbf16, #tpu.memory_space<vmem>>, vector<16x32xbf16>
    %c0_35 = arith.constant 0 : index
    %c0_36 = arith.constant 0 : index
    %28 = vector.load %arg17[%c0_35, %c0_36] : memref<32x128xbf16, #tpu.memory_space<vmem>>, vector<32x128xbf16>
    %cst_37 = arith.constant dense<0.000000e+00> : vector<16x128xf32>
    %29 = tpu.matmul %27, %28, %cst_37 {dimension_numbers = #tpu.dot_dimension_numbers<[1], [0], [0], [1], [0, 0, 1, 1], [], []>} : vector<16x32xbf16>, vector<32x128xbf16>, vector<16x128xf32> -> vector<16x128xf32>
    %30 = arith.addf %26, %29 : vector<16x128xf32>
    %c0_38 = arith.constant 0 : index
    %c0_39 = arith.constant 0 : index
    %31 = vector.load %arg9[%c0_38, %c0_39] : memref<16x32xbf16, #tpu.memory_space<vmem>>, vector<16x32xbf16>
    %c0_40 = arith.constant 0 : index
    %c0_41 = arith.constant 0 : index
    %32 = vector.load %arg18[%c0_40, %c0_41] : memref<32x128xbf16, #tpu.memory_space<vmem>>, vector<32x128xbf16>
    %cst_42 = arith.constant dense<0.000000e+00> : vector<16x128xf32>
    %33 = tpu.matmul %31, %32, %cst_42 {dimension_numbers = #tpu.dot_dimension_numbers<[1], [0], [0], [1], [0, 0, 1, 1], [], []>} : vector<16x32xbf16>, vector<32x128xbf16>, vector<16x128xf32> -> vector<16x128xf32>
    %34 = arith.addf %30, %33 : vector<16x128xf32>
    %c0_43 = arith.constant 0 : index
    %c0_44 = arith.constant 0 : index
    %35 = vector.load %arg19[%c0_43, %c0_44] : memref<1x128xf32, #tpu.memory_space<vmem>>, vector<1x128xf32>
    %36 = vector.broadcast %35 : vector<1x128xf32> to vector<16x128xf32>
    %37 = arith.addf %34, %36 : vector<16x128xf32>
    %38 = arith.truncf %37 : vector<16x128xf32> to vector<16x128xbf16>
    %c0_45 = arith.constant 0 : index
    %c0_46 = arith.constant 0 : index
    %39 = vector.load %arg20[%c0_45, %c0_46] : memref<16x128xbf16, #tpu.memory_space<vmem>>, vector<16x128xbf16>
    tpu.vector_store %arg20[%c0_45, %c0_46], %38 {strides = array<i32>} : memref<16x128xbf16, #tpu.memory_space<vmem>>, vector<16x128xbf16>,
    return
  }
  func.func @transform_0(%arg0: i32) -> (i32, i32) {
    %c0_i32 = arith.constant 0 : i32
    %c0_i32_0 = arith.constant 0 : i32
    return %arg0, %c0_i32 : i32, i32
  }
  func.func @transform_1(%arg0: i32) -> (i32, i32) {
    %c0_i32 = arith.constant 0 : i32
    %c0_i32_0 = arith.constant 0 : i32
    return %arg0, %c0_i32 : i32, i32
  }
  func.func @transform_2(%arg0: i32) -> (i32, i32) {
    %c0_i32 = arith.constant 0 : i32
    %c0_i32_0 = arith.constant 0 : i32
    return %arg0, %c0_i32 : i32, i32
  }
  func.func @transform_3(%arg0: i32) -> (i32, i32) {
    %c0_i32 = arith.constant 0 : i32
    %c0_i32_0 = arith.constant 0 : i32
    return %arg0, %c0_i32 : i32, i32
  }
  func.func @transform_4(%arg0: i32) -> (i32, i32) {
    %c0_i32 = arith.constant 0 : i32
    %c0_i32_0 = arith.constant 0 : i32
    return %arg0, %c0_i32 : i32, i32
  }
  func.func @transform_5(%arg0: i32) -> (i32, i32) {
    %c0_i32 = arith.constant 0 : i32
    %c0_i32_0 = arith.constant 0 : i32
    return %arg0, %c0_i32 : i32, i32
  }
  func.func @transform_6(%arg0: i32) -> (i32, i32) {
    %c0_i32 = arith.constant 0 : i32
    %c0_i32_0 = arith.constant 0 : i32
    return %arg0, %c0_i32 : i32, i32
  }
  func.func @transform_7(%arg0: i32) -> (i32, i32) {
    %c0_i32 = arith.constant 0 : i32
    %c0_i32_0 = arith.constant 0 : i32
    return %arg0, %c0_i32 : i32, i32
  }
  func.func @transform_8(%arg0: i32) -> (i32, i32) {
    %c0_i32 = arith.constant 0 : i32
    %c0_i32_0 = arith.constant 0 : i32
    return %arg0, %c0_i32 : i32, i32
  }
  func.func @transform_9(%arg0: i32) -> (i32, i32) {
    %c0_i32 = arith.constant 0 : i32
    %c0_i32_0 = arith.constant 0 : i32
    %c0_i32_1 = arith.constant 0 : i32
    return %c0_i32, %c0_i32_0 : i32, i32
  }
  func.func @transform_10(%arg0: i32) -> (i32, i32) {
    %c0_i32 = arith.constant 0 : i32
    %c0_i32_0 = arith.constant 0 : i32
    %c0_i32_1 = arith.constant 0 : i32
    return %c0_i32, %c0_i32_0 : i32, i32
  }
  func.func @transform_11(%arg0: i32) -> (i32, i32) {
    %c0_i32 = arith.constant 0 : i32
    %c0_i32_0 = arith.constant 0 : i32
    %c0_i32_1 = arith.constant 0 : i32
    return %c0_i32, %c0_i32_0 : i32, i32
  }
  func.func @transform_12(%arg0: i32) -> (i32, i32) {
    %c0_i32 = arith.constant 0 : i32
    %c0_i32_0 = arith.constant 0 : i32
    %c0_i32_1 = arith.constant 0 : i32
    return %c0_i32, %c0_i32_0 : i32, i32
  }
  func.func @transform_13(%arg0: i32) -> (i32, i32) {
    %c0_i32 = arith.constant 0 : i32
    %c0_i32_0 = arith.constant 0 : i32
    %c0_i32_1 = arith.constant 0 : i32
    return %c0_i32, %c0_i32_0 : i32, i32
  }
  func.func @transform_14(%arg0: i32) -> (i32, i32) {
    %c0_i32 = arith.constant 0 : i32
    %c0_i32_0 = arith.constant 0 : i32
    %c0_i32_1 = arith.constant 0 : i32
    return %c0_i32, %c0_i32_0 : i32, i32
  }
  func.func @transform_15(%arg0: i32) -> (i32, i32) {
    %c0_i32 = arith.constant 0 : i32
    %c0_i32_0 = arith.constant 0 : i32
    %c0_i32_1 = arith.constant 0 : i32
    return %c0_i32, %c0_i32_0 : i32, i32
  }
  func.func @transform_16(%arg0: i32) -> (i32, i32) {
    %c0_i32 = arith.constant 0 : i32
    %c0_i32_0 = arith.constant 0 : i32
    %c0_i32_1 = arith.constant 0 : i32
    return %c0_i32, %c0_i32_0 : i32, i32
  }
  func.func @transform_17(%arg0: i32) -> (i32, i32) {
    %c0_i32 = arith.constant 0 : i32
    %c0_i32_0 = arith.constant 0 : i32
    %c0_i32_1 = arith.constant 0 : i32
    return %c0_i32, %c0_i32_0 : i32, i32
  }
  func.func @transform_18(%arg0: i32) -> (i32, i32) {
    %c0_i32 = arith.constant 0 : i32
    %c0_i32_0 = arith.constant 0 : i32
    %c0_i32_1 = arith.constant 0 : i32
    return %c0_i32, %c0_i32_0 : i32, i32
  }
  func.func @transform_19(%arg0: i32) -> (i32, i32) {
    %c0_i32 = arith.constant 0 : i32
    %c0_i32_0 = arith.constant 0 : i32
    return %arg0, %c0_i32 : i32, i32
  }
}

module attributes {stable_mosaic.version = 11 : i64} {
  func.func @_fused_matmul_kernel(%arg0: i32, %arg1: memref<16x32xbf16, #tpu.memory_space<vmem>>, %arg2: memref<32x128xbf16, #tpu.memory_space<vmem>>, %arg3: memref<1x128xf32, #tpu.memory_space<vmem>>, %arg4: memref<16x128xbf16, #tpu.memory_space<vmem>>) attributes {dimension_semantics = [#tpu.dimension_semantics<parallel>], iteration_bounds = array<i64: 2>, scalar_prefetch = 0 : i64, scratch_operands = 0 : i64, tpu.core_type = #tpu.core_type<tc>, window_params = [{transform_indices = @transform_0, window_bounds = array<i64: 16, 32>}, {pipeline_mode = #tpu.pipeline_mode<synchronous>, transform_indices = @transform_1, window_bounds = array<i64: 32, 128>}, {pipeline_mode = #tpu.pipeline_mode<synchronous>, transform_indices = @transform_2, window_bounds = array<i64: 1, 128>}, {transform_indices = @transform_3, window_bounds = array<i64: 16, 128>}]} {
    %c0 = arith.constant 0 : index
    %c0_0 = arith.constant 0 : index
    %0 = vector.load %arg1[%c0, %c0_0] : memref<16x32xbf16, #tpu.memory_space<vmem>>, vector<16x32xbf16>
    %c0_1 = arith.constant 0 : index
    %c0_2 = arith.constant 0 : index
    %1 = vector.load %arg2[%c0_1, %c0_2] : memref<32x128xbf16, #tpu.memory_space<vmem>>, vector<32x128xbf16>
    %cst = arith.constant dense<0.000000e+00> : vector<16x128xf32>
    %2 = tpu.matmul %0, %1, %cst {dimension_numbers = #tpu.dot_dimension_numbers<[1], [0], [0], [1], [0, 0, 1, 1], [], []>} : vector<16x32xbf16>, vector<32x128xbf16>, vector<16x128xf32> -> vector<16x128xf32>
    %c0_3 = arith.constant 0 : index
    %c0_4 = arith.constant 0 : index
    %3 = vector.load %arg3[%c0_3, %c0_4] : memref<1x128xf32, #tpu.memory_space<vmem>>, vector<1x128xf32>
    %4 = vector.broadcast %3 : vector<1x128xf32> to vector<16x128xf32>
    %5 = arith.addf %2, %4 : vector<16x128xf32>
    %6 = arith.truncf %5 : vector<16x128xf32> to vector<16x128xbf16>
    %c0_5 = arith.constant 0 : index
    %c0_6 = arith.constant 0 : index
    %7 = vector.load %arg4[%c0_5, %c0_6] : memref<16x128xbf16, #tpu.memory_space<vmem>>, vector<16x128xbf16>
    tpu.vector_store %arg4[%c0_5, %c0_6], %6 {strides = array<i32>} : memref<16x128xbf16, #tpu.memory_space<vmem>>, vector<16x128xbf16>,
    return
  }
  func.func @transform_0(%arg0: i32) -> (i32, i32) {
    %c0_i32 = arith.constant 0 : i32
    %c0_i32_0 = arith.constant 0 : i32
    return %arg0, %c0_i32 : i32, i32
  }
  func.func @transform_1(%arg0: i32) -> (i32, i32) {
    %c0_i32 = arith.constant 0 : i32
    %c0_i32_0 = arith.constant 0 : i32
    %c0_i32_1 = arith.constant 0 : i32
    return %c0_i32, %c0_i32_0 : i32, i32
  }
  func.func @transform_2(%arg0: i32) -> (i32, i32) {
    %c0_i32 = arith.constant 0 : i32
    %c0_i32_0 = arith.constant 0 : i32
    %c0_i32_1 = arith.constant 0 : i32
    return %c0_i32, %c0_i32_0 : i32, i32
  }
  func.func @transform_3(%arg0: i32) -> (i32, i32) {
    %c0_i32 = arith.constant 0 : i32
    %c0_i32_0 = arith.constant 0 : i32
    return %arg0, %c0_i32 : i32, i32
  }
}

module attributes {stable_mosaic.version = 11 : i64} {
  func.func @_fused_matmul_kernel(%arg0: i32, %arg1: memref<64x32xbf16, #tpu.memory_space<vmem>>, %arg2: memref<64x32xbf16, #tpu.memory_space<vmem>>, %arg3: memref<32x48xbf16, #tpu.memory_space<vmem>>, %arg4: memref<32x48xbf16, #tpu.memory_space<vmem>>, %arg5: memref<1x48xf32, #tpu.memory_space<vmem>>, %arg6: memref<64x48xf32, #tpu.memory_space<vmem>>) attributes {dimension_semantics = [#tpu.dimension_semantics<parallel>], iteration_bounds = array<i64: 2>, scalar_prefetch = 0 : i64, scratch_operands = 0 : i64, tpu.core_type = #tpu.core_type<tc>, window_params = [{transform_indices = @transform_0, window_bounds = array<i64: 64, 32>}, {transform_indices = @transform_1, window_bounds = array<i64: 64, 32>}, {pipeline_mode = #tpu.pipeline_mode<synchronous>, transform_indices = @transform_2, window_bounds = array<i64: 32, 48>}, {pipeline_mode = #tpu.pipeline_mode<synchronous>, transform_indices = @transform_3, window_bounds = array<i64: 32, 48>}, {pipeline_mode = #tpu.pipeline_mode<synchronous>, transform_indices = @transform_4, window_bounds = array<i64: 1, 48>}, {transform_indices = @transform_5, window_bounds = array<i64: 64, 48>}]} {
    %c0 = arith.constant 0 : index
    %c0_0 = arith.constant 0 : index
    %0 = vector.load %arg1[%c0, %c0_0] : memref<64x32xbf16, #tpu.memory_space<vmem>>, vector<64x32xbf16>
    %c0_1 = arith.constant 0 : index
    %c0_2 = arith.constant 0 : index
    %1 = vector.load %arg3[%c0_1, %c0_2] : memref<32x48xbf16, #tpu.memory_space<vmem>>, vector<32x48xbf16>
    %cst = arith.constant dense<0.000000e+00> : vector<64x48xf32>
    %2 = tpu.matmul %0, %1, %cst {dimension_numbers = #tpu.dot_dimension_numbers<[1], [0], [0], [1], [0, 0, 1, 1], [], []>} : vector<64x32xbf16>, vector<32x48xbf16>, vector<64x48xf32> -> vector<64x48xf32>
    %c0_3 = arith.constant 0 : index
    %c0_4 = arith.constant 0 : index
    %3 = vector.load %arg2[%c0_3, %c0_4] : memref<64x32xbf16, #tpu.memory_space<vmem>>, vector<64x32xbf16>
    %c0_5 = arith.constant 0 : index
    %c0_6 = arith.constant 0 : index
    %4 = vector.load %arg4[%c0_5, %c0_6] : memref<32x48xbf16, #tpu.memory_space<vmem>>, vector<32x48xbf16>
    %cst_7 = arith.constant dense<0.000000e+00> : vector<64x48xf32>
    %5 = tpu.matmul %3, %4, %cst_7 {dimension_numbers = #tpu.dot_dimension_numbers<[1], [0], [0], [1], [0, 0, 1, 1], [], []>} : vector<64x32xbf16>, vector<32x48xbf16>, vector<64x48xf32> -> vector<64x48xf32>
    %6 = arith.addf %2, %5 : vector<64x48xf32>
    %c0_8 = arith.constant 0 : index
    %c0_9 = arith.constant 0 : index
    %7 = vector.load %arg5[%c0_8, %c0_9] : memref<1x48xf32, #tpu.memory_space<vmem>>, vector<1x48xf32>
    %8 = vector.broadcast %7 : vector<1x48xf32> to vector<64x48xf32>
    %9 = arith.addf %6, %8 : vector<64x48xf32>
    %c0_10 = arith.constant 0 : index
    %c0_11 = arith.constant 0 : index
    %10 = vector.load %arg6[%c0_10, %c0_11] : memref<64x48xf32, #tpu.memory_space<vmem>>, vector<64x48xf32>
    tpu.vector_store %arg6[%c0_10, %c0_11], %9 {strides = array<i32>} : memref<64x48xf32, #tpu.memory_space<vmem>>, vector<64x48xf32>,
    return
  }
  func.func @transform_0(%arg0: i32) -> (i32, i32) {
    %c0_i32 = arith.constant 0 : i32
    %c0_i32_0 = arith.constant 0 : i32
    return %arg0, %c0_i32 : i32, i32
  }
  func.func @transform_1(%arg0: i32) -> (i32, i32) {
    %c0_i32 = arith.constant 0 : i32
    %c0_i32_0 = arith.constant 0 : i32
    return %arg0, %c0_i32 : i32, i32
  }
  func.func @transform_2(%arg0: i32) -> (i32, i32) {
    %c0_i32 = arith.constant 0 : i32
    %c0_i32_0 = arith.constant 0 : i32
    %c0_i32_1 = arith.constant 0 : i32
    return %c0_i32, %c0_i32_0 : i32, i32
  }
  func.func @transform_3(%arg0: i32) -> (i32, i32) {
    %c0_i32 = arith.constant 0 : i32
    %c0_i32_0 = arith.constant 0 : i32
    %c0_i32_1 = arith.constant 0 : i32
    return %c0_i32, %c0_i32_0 : i32, i32
  }
  func.func @transform_4(%arg0: i32) -> (i32, i32) {
    %c0_i32 = arith.constant 0 : i32
    %c0_i32_0 = arith.constant 0 : i32
    %c0_i32_1 = arith.constant 0 : i32
    return %c0_i32, %c0_i32_0 : i32, i32
  }
  func.func @transform_5(%arg0: i32) -> (i32, i32) {
    %c0_i32 = arith.constant 0 : i32
    %c0_i32_0 = arith.constant 0 : i32
    return %arg0, %c0_i32 : i32, i32
  }
}

module attributes {stable_mosaic.version = 11 : i64} {
  func.func @_vq_fused_kernel(%arg0: i32, %arg1: memref<64x32xbf16, #tpu.memory_space<vmem>>, %arg2: memref<64x16xbf16, #tpu.memory_space<vmem>>, %arg3: memref<32x32xbf16, #tpu.memory_space<vmem>>, %arg4: memref<16x32xbf16, #tpu.memory_space<vmem>>, %arg5: memref<1x32xf32, #tpu.memory_space<vmem>>, %arg6: memref<32x128xbf16, #tpu.memory_space<vmem>>, %arg7: memref<1x128xf32, #tpu.memory_space<vmem>>, %arg8: memref<33x128xf32, #tpu.memory_space<vmem>>, %arg9: memref<64x34xf32, #tpu.memory_space<vmem>>) attributes {dimension_semantics = [#tpu.dimension_semantics<parallel>], iteration_bounds = array<i64: 2>, scalar_prefetch = 0 : i64, scratch_operands = 0 : i64, tpu.core_type = #tpu.core_type<tc>, window_params = [{transform_indices = @transform_0, window_bounds = array<i64: 64, 32>}, {transform_indices = @transform_1, window_bounds = array<i64: 64, 16>}, {pipeline_mode = #tpu.pipeline_mode<synchronous>, transform_indices = @transform_2, window_bounds = array<i64: 32, 32>}, {pipeline_mode = #tpu.pipeline_mode<synchronous>, transform_indices = @transform_3, window_bounds = array<i64: 16, 32>}, {pipeline_mode = #tpu.pipeline_mode<synchronous>, transform_indices = @transform_4, window_bounds = array<i64: 1, 32>}, {pipeline_mode = #tpu.pipeline_mode<synchronous>, transform_indices = @transform_5, window_bounds = array<i64: 32, 128>}, {pipeline_mode = #tpu.pipeline_mode<synchronous>, transform_indices = @transform_6, window_bounds = array<i64: 1, 128>}, {pipeline_mode = #tpu.pipeline_mode<synchronous>, transform_indices = @transform_7, window_bounds = array<i64: 33, 128>}, {transform_indices = @transform_8, window_bounds = array<i64: 64, 34>}]} {
    %c0 = arith.constant 0 : index
    %c0_0 = arith.constant 0 : index
    %0 = vector.load %arg1[%c0, %c0_0] : memref<64x32xbf16, #tpu.memory_space<vmem>>, vector<64x32xbf16>
    %c0_1 = arith.constant 0 : index
    %c0_2 = arith.constant 0 : index
    %1 = vector.load %arg3[%c0_1, %c0_2] : memref<32x32xbf16, #tpu.memory_space<vmem>>, vector<32x32xbf16>
    %cst = arith.constant dense<0.000000e+00> : vector<64x32xf32>
    %2 = tpu.matmul %0, %1, %cst {dimension_numbers = #tpu.dot_dimension_numbers<[1], [0], [0], [1], [0, 0, 1, 1], [], []>} : vector<64x32xbf16>, vector<32x32xbf16>, vector<64x32xf32> -> vector<64x32xf32>
    %c0_3 = arith.constant 0 : index
    %c0_4 = arith.constant 0 : index
    %3 = vector.load %arg2[%c0_3, %c0_4] : memref<64x16xbf16, #tpu.memory_space<vmem>>, vector<64x16xbf16>
    %c0_5 = arith.constant 0 : index
    %c0_6 = arith.constant 0 : index
    %4 = vector.load %arg4[%c0_5, %c0_6] : memref<16x32xbf16, #tpu.memory_space<vmem>>, vector<16x32xbf16>
    %cst_7 = arith.constant dense<0.000000e+00> : vector<64x32xf32>
    %5 = tpu.matmul %3, %4, %cst_7 {dimension_numbers = #tpu.dot_dimension_numbers<[1], [0], [0], [1], [0, 0, 1, 1], [], []>} : vector<64x16xbf16>, vector<16x32xbf16>, vector<64x32xf32> -> vector<64x32xf32>
    %6 = arith.addf %2, %5 : vector<64x32xf32>
    %c0_8 = arith.constant 0 : index
    %c0_9 = arith.constant 0 : index
    %7 = vector.load %arg5[%c0_8, %c0_9] : memref<1x32xf32, #tpu.memory_space<vmem>>, vector<1x32xf32>
    %8 = vector.broadcast %7 : vector<1x32xf32> to vector<64x32xf32>
    %9 = arith.addf %6, %8 : vector<64x32xf32>
    %10 = arith.truncf %9 : vector<64x32xf32> to vector<64x32xbf16>
    %c0_10 = arith.constant 0 : index
    %c0_11 = arith.constant 0 : index
    %11 = vector.load %arg6[%c0_10, %c0_11] : memref<32x128xbf16, #tpu.memory_space<vmem>>, vector<32x128xbf16>
    %cst_12 = arith.constant dense<0.000000e+00> : vector<64x128xf32>
    %12 = tpu.matmul %10, %11, %cst_12 {dimension_numbers = #tpu.dot_dimension_numbers<[1], [0], [0], [1], [0, 0, 1, 1], [], []>} : vector<64x32xbf16>, vector<32x128xbf16>, vector<64x128xf32> -> vector<64x128xf32>
    %c0_13 = arith.constant 0 : index
    %c0_14 = arith.constant 0 : index
    %13 = vector.load %arg7[%c0_13, %c0_14] : memref<1x128xf32, #tpu.memory_space<vmem>>, vector<1x128xf32>
    %cst_15 = arith.constant 2.000000e+00 : f32
    %14 = vector.broadcast %cst_15 : f32 to vector<64x128xf32>
    %15 = arith.mulf %14, %12 : vector<64x128xf32>
    %16 = vector.broadcast %13 : vector<1x128xf32> to vector<64x128xf32>
    %17 = arith.subf %16, %15 : vector<64x128xf32>
    %cst_16 = arith.constant dense<0x7F800000> : vector<64xf32>
    %18 = vector.multi_reduction <minimumf>, %17, %cst_16 [1] : vector<64x128xf32> to vector<64xf32>
    %19 = vector.shape_cast %18 : vector<64xf32> to vector<64x1xf32>
    %20 = tpu.iota {dimensions = array<i32: 1>} : vector<64x128xi32>
    %21 = vector.broadcast %19 : vector<64x1xf32> to vector<64x128xf32>
    %22 = arith.cmpf oeq, %17, %21 : vector<64x128xf32>
    %c128_i32 = arith.constant 128 : i32
    %23 = vector.broadcast %c128_i32 : i32 to vector<64x128xi32>
    %24 = arith.select %22, %20, %23 : vector<64x128xi1>, vector<64x128xi32>
    %cst_17 = arith.constant dense<2147483647> : vector<64xi32>
    %25 = vector.multi_reduction <minsi>, %24, %cst_17 [1] : vector<64x128xi32> to vector<64xi32>
    %26 = vector.shape_cast %25 : vector<64xi32> to vector<64x1xi32>
    %27 = vector.broadcast %26 : vector<64x1xi32> to vector<64x128xi32>
    %28 = arith.cmpi eq, %20, %27 : vector<64x128xi32>
    %29 = arith.extui %28 : vector<64x128xi1> to vector<64x128xi32>
    %30 = arith.sitofp %29 : vector<64x128xi32> to vector<64x128xf32>
    %c0_18 = arith.constant 0 : index
    %c0_19 = arith.constant 0 : index
    %31 = vector.load %arg8[%c0_18, %c0_19] : memref<33x128xf32, #tpu.memory_space<vmem>>, vector<33x128xf32>
    %cst_20 = arith.constant dense<0.000000e+00> : vector<64x33xf32>
    %32 = tpu.matmul %30, %31, %cst_20 {dimension_numbers = #tpu.dot_dimension_numbers<[1], [1], [0], [0], [0, 0, 1, 0], [], []>} : vector<64x128xf32>, vector<33x128xf32>, vector<64x33xf32> -> vector<64x33xf32>
    %33 = vector.extract_strided_slice %32 {offsets = [0, 0], sizes = [64, 32], strides = [1, 1]} : vector<64x33xf32> to vector<64x32xf32>
    %34 = arith.subf %33, %9 : vector<64x32xf32>
    %35 = arith.mulf %34, %34 : vector<64x32xf32>
    %cst_21 = arith.constant dense<0.000000e+00> : vector<64xf32>
    %36 = vector.multi_reduction <add>, %35, %cst_21 [1] : vector<64x32xf32> to vector<64xf32>
    %37 = vector.shape_cast %36 : vector<64xf32> to vector<64x1xf32>
    %c0_22 = arith.constant 0 : index
    %c0_23 = arith.constant 0 : index
    %38 = vector.load %arg9[%c0_22, %c0_23] : memref<64x34xf32, #tpu.memory_space<vmem>>, vector<64x33xf32>
    tpu.vector_store %arg9[%c0_22, %c0_23], %32 {strides = array<i32>} : memref<64x34xf32, #tpu.memory_space<vmem>>, vector<64x33xf32>,
    %c0_24 = arith.constant 0 : index
    %c33 = arith.constant 33 : index
    %39 = vector.load %arg9[%c0_24, %c33] : memref<64x34xf32, #tpu.memory_space<vmem>>, vector<64x1xf32>
    tpu.vector_store %arg9[%c0_24, %c33], %37 {strides = array<i32>} : memref<64x34xf32, #tpu.memory_space<vmem>>, vector<64x1xf32>,
    return
  }
  func.func @transform_0(%arg0: i32) -> (i32, i32) {
    %c0_i32 = arith.constant 0 : i32
    %c0_i32_0 = arith.constant 0 : i32
    return %arg0, %c0_i32 : i32, i32
  }
  func.func @transform_1(%arg0: i32) -> (i32, i32) {
    %c0_i32 = arith.constant 0 : i32
    %c0_i32_0 = arith.constant 0 : i32
    return %arg0, %c0_i32 : i32, i32
  }
  func.func @transform_2(%arg0: i32) -> (i32, i32) {
    %c0_i32 = arith.constant 0 : i32
    %c0_i32_0 = arith.constant 0 : i32
    %c0_i32_1 = arith.constant 0 : i32
    return %c0_i32, %c0_i32_0 : i32, i32
  }
  func.func @transform_3(%arg0: i32) -> (i32, i32) {
    %c0_i32 = arith.constant 0 : i32
    %c0_i32_0 = arith.constant 0 : i32
    %c0_i32_1 = arith.constant 0 : i32
    return %c0_i32, %c0_i32_0 : i32, i32
  }
  func.func @transform_4(%arg0: i32) -> (i32, i32) {
    %c0_i32 = arith.constant 0 : i32
    %c0_i32_0 = arith.constant 0 : i32
    %c0_i32_1 = arith.constant 0 : i32
    return %c0_i32, %c0_i32_0 : i32, i32
  }
  func.func @transform_5(%arg0: i32) -> (i32, i32) {
    %c0_i32 = arith.constant 0 : i32
    %c0_i32_0 = arith.constant 0 : i32
    %c0_i32_1 = arith.constant 0 : i32
    return %c0_i32, %c0_i32_0 : i32, i32
  }
  func.func @transform_6(%arg0: i32) -> (i32, i32) {
    %c0_i32 = arith.constant 0 : i32
    %c0_i32_0 = arith.constant 0 : i32
    %c0_i32_1 = arith.constant 0 : i32
    return %c0_i32, %c0_i32_0 : i32, i32
  }
  func.func @transform_7(%arg0: i32) -> (i32, i32) {
    %c0_i32 = arith.constant 0 : i32
    %c0_i32_0 = arith.constant 0 : i32
    %c0_i32_1 = arith.constant 0 : i32
    return %c0_i32, %c0_i32_0 : i32, i32
  }
  func.func @transform_8(%arg0: i32) -> (i32, i32) {
    %c0_i32 = arith.constant 0 : i32
    %c0_i32_0 = arith.constant 0 : i32
    return %arg0, %c0_i32 : i32, i32
  }
}

</mosaic_0001>

<bundles_post_ra>
// kernel: vqae2_forward.7
= control target key start
LH: loop header
LB: loop body
LE: loop exit
PB: predicated region body
PF: predicated region fallthrough
CT: control target
= control target key end

     0   :  { %s450_s12 = smov 0   ;;  %s500_s0 = inlined_call_operand.vmem [shape: bf16[128,48], index: 0, kind: input, shape index: {}]   ;;  %s501_s1 = inlined_call_operand.vmem [shape: bf16[48,16], index: 1, kind: input, shape index: {}]   ;;  %s502_s2 = inlined_call_operand.vmem [shape: f32[1,16], index: 2, kind: input, shape index: {}]   ;;  %s503_s3 = inlined_call_operand.vmem [shape: bf16[128,16], index: 3, kind: output, shape index: {}]  }
   0x1 LB: > { %s354_s13 = sadd.s32 4294967295, %s428_s12   ;;  %p358_p0 = scmp.ge.s32.totalorder %s428_s12, 1  ;;  %s428_s12 = sphi %s450_s12, %s13_s12  }
   0x2   : > { %p138_p1 = scmp.lt.s32.totalorder %s428_s12, 3 }
   0x4   : > { %p139_p2 = pnand %p358_p0, %p138_p1 }
   0x5   : > { %s359_s16 = sshll.u32 (!%p139_p2), %s354_s13, 3 }
   0x6   : > { %142 = sbr.rel (%p139_p2) target bundleno = 172 (0xac), region = 32  ;;  %p163_p3 = scmp.lt.s32.totalorder (!%p139_p2), %s359_s16, 15 }
   0xb   : > { %v403_v0 = vld [vmem:[%s501_s1 + $0x10] sm:$0xff]  ;;  %v402_v1 = vld [vmem:[%s501_s1 + $0x8] sm:$0xff]  ;;  %s505_s16 = smov (!%p163_p3, %s359_s16), 15  ;;  %v401_v2 = vld [vmem:[%s501_s1] sm:$0xff]  ;;  %vm231_vm0 = vcmask 392192   ;;  %vm289_vm1 = vcmask 125952  }
   0xc   : > { %249 = vmatpush.bf16.msra.mxu0 %v403_v0  ;;  %404 = vmatpush.bf16.msra.mxu1 %v403_v0  ;;  %s360_s19 = sshll.u32 %s505_s16, 2  ;;  %v421_v7 = vld [vmem:[%s502_s2] ss:$0 sm:$0xff] }
   0xd   : > { %405 = vmatpush.bf16.msra.mxu2 %v403_v0  ;;  %406 = vmatpush.bf16.msra.mxu3 %v403_v0  ;;  %s166_s24 = scalar_lea.vmem %s500_s0, %s360_s19  ;;  %s479_s29 = scalar_lea.vmem %s503_s3, %s360_s19 }
   0xe   : > { %v397_v3 = vld [vmem:[%s166_s24] sm:$0xff]  ;;  %v398_v4 = vld [vmem:[%s166_s24 + $0x8] sm:$0xff]  ;;  %v399_v5 = vld [vmem:[%s166_s24 + $0x10] sm:$0xff] }
   0xf   : > { %v400_v6 = vld [vmem:[%s166_s24 + $0x18] sm:$0xff] }
  0x10   : > { %250 = vmatpush.bf16.msra.mxu0 %v402_v1  ;;  %407 = vmatpush.bf16.msra.mxu1 %v402_v1 }
  0x11   : > { %408 = vmatpush.bf16.msra.mxu2 %v402_v1  ;;  %409 = vmatpush.bf16.msra.mxu3 %v402_v1 }
  0x14   : > { %251 = vmatpush.bf16.msra.mxu0 %v401_v2  ;;  %410 = vmatpush.bf16.msra.mxu1 %v401_v2 }
  0x15   : > { %411 = vmatpush.bf16.msra.mxu2 %v401_v2  ;;  %412 = vmatpush.bf16.msra.mxu3 %v401_v2 }
  0x17   : > { %391 = vmatmul.msk.bf16.vlgmr.msra.gmra.mxu0 %vm231_vm0, %v397_v3  ;;  %392 = vmatmul.msk.bf16.vlgmr.msra.gmra.mxu1 %vm231_vm0, %v398_v4 }
  0x18   : > { %393 = vmatmul.msk.bf16.vlgmr.msra.gmra.mxu2 %vm231_vm0, %v399_v5  ;;  %394 = vmatmul.msk.bf16.vlgmr.msra.gmra.mxu3 %vm231_vm0, %v400_v6 }
  0x94   : > { %v253_v8 = vpop.f32.mrf.mxu0  ;;  %v258_v9 = vpop.f32.mrf.mxu1 }
  0x95   : > { %v254_v10 = vadd.f32 %v421_v7, %v253_v8  ;;  %v259_v11 = vadd.f32 %v421_v7, %v258_v9 }
  0x97   : > { %v273_v12 = vmax.f32 %v254_v10, 0.0  ;;  %v275_v13 = vmax.f32 %v259_v11, 0.0 }
  0x99   : > { %v281_v14 = vpack.c.bf16 %v273_v12, %v273_v12  ;;  %v283_v15 = vpack.c.bf16 %v275_v13, %v275_v13 }
  0x9b   : > { %290 = vst.msk [vmem:[%s479_s29] sm:$0xf] %vm289_vm1, %v281_v14  ;;  %v263_v16 = vpop.f32.mrf.mxu2  ;;  %v268_v17 = vpop.f32.mrf.mxu3 }
  0x9c   : > { %292 = vst.msk [vmem:[%s479_s29 + $0x8] sm:$0xf] %vm289_vm1, %v283_v15  ;;  %v264_v18 = vadd.f32 %v421_v7, %v263_v16  ;;  %v269_v19 = vadd.f32 %v421_v7, %v268_v17  ;;  %v255_v20 = vpop.f32.mrf.mxu0  ;;  %v260_v21 = vpop.f32.mrf.mxu1 }
  0x9d   : > { %v256_v22 = vadd.f32 %v421_v7, %v255_v20  ;;  %v261_v23 = vadd.f32 %v421_v7, %v260_v21 }
  0x9e   : > { %v277_v24 = vmax.f32 %v264_v18, 0.0  ;;  %v279_v25 = vmax.f32 %v269_v19, 0.0 }
  0x9f   : > { %v274_v26 = vmax.f32 %v256_v22, 0.0  ;;  %v276_v27 = vmax.f32 %v261_v23, 0.0 }
  0xa0   : > { %v285_v28 = vpack.c.bf16 %v277_v24, %v277_v24  ;;  %v287_v29 = vpack.c.bf16 %v279_v25, %v279_v25 }
  0xa1   : > { %v282_v30 = vpack.c.bf16 %v274_v26, %v274_v26  ;;  %v284_v31 = vpack.c.bf16 %v276_v27, %v276_v27 }
  0xa2   : > { %294 = vst.msk [vmem:[%s479_s29 + $0x10] sm:$0xf] %vm289_vm1, %v285_v28 }
  0xa3   : > { %296 = vst.msk [vmem:[%s479_s29 + $0x18] sm:$0xf] %vm289_vm1, %v287_v29  ;;  %v265_v32 = vpop.f32.mrf.mxu2  ;;  %v270_v33 = vpop.f32.mrf.mxu3 }
  0xa4   : > { %291 = vst.msk [vmem:[%s479_s29 + $0x4] sm:$0xf] %vm289_vm1, %v282_v30  ;;  %v266_v34 = vadd.f32 %v421_v7, %v265_v32  ;;  %v271_v35 = vadd.f32 %v421_v7, %v270_v33 }
  0xa5   : > { %293 = vst.msk [vmem:[%s479_s29 + $0xc] sm:$0xf] %vm289_vm1, %v284_v31 }
  0xa6   : > { %v278_v36 = vmax.f32 %v266_v34, 0.0  ;;  %v280_v37 = vmax.f32 %v271_v35, 0.0 }
  0xa8   : > { %v286_v38 = vpack.c.bf16 %v278_v36, %v278_v36  ;;  %v288_v39 = vpack.c.bf16 %v280_v37, %v280_v37 }
  0xaa   : > { %295 = vst.msk [vmem:[%s479_s29 + $0x14] sm:$0xf] %vm289_vm1, %v286_v38 }
  0xab   : > { %297 = vst.msk [vmem:[%s479_s29 + $0x1c] sm:$0xf] %vm289_vm1, %v288_v39 }
  0xac PF: > { %s13_s12 = sadd.s32 1, %s428_s12  }
  0xad   : > { %p10_p4 = scmp.ge.s32.totalorder %s13_s12, 4  }
  0xaf   :  { %12 = sbr.rel (!%p10_p4) target bundleno = 1 (0x1), region = 62 }

// kernel: vqae2_forward.8
= control target key start
LH: loop header
LB: loop body
LE: loop exit
PB: predicated region body
PF: predicated region fallthrough
CT: control target
= control target key end

     0   :  { %s373_s12 = smov 0   ;;  %s405_s0 = inlined_call_operand.vmem [shape: bf16[32,64], index: 0, kind: input, shape index: {}]   ;;  %s406_s1 = inlined_call_operand.vmem [shape: bf16[64,32], index: 1, kind: input, shape index: {}]   ;;  %s407_s2 = inlined_call_operand.vmem [shape: f32[1,32], index: 2, kind: input, shape index: {}]   ;;  %s408_s3 = inlined_call_operand.vmem [shape: bf16[32,32], index: 3, kind: output, shape index: {}]  }
   0x1 LB: > { %s299_s13 = sadd.s32 4294967295, %s351_s12   ;;  %p303_p0 = scmp.ge.s32.totalorder %s351_s12, 1  ;;  %s351_s12 = sphi %s373_s12, %s13_s12  }
   0x2   : > { %p138_p1 = scmp.lt.s32.totalorder %s351_s12, 3 }
   0x4   : > { %p139_p2 = pnand %p303_p0, %p138_p1 }
   0x5   : > { %s304_s16 = sshll.u32 (!%p139_p2), %s299_s13, 1 }
   0x6   : > { %142 = sbr.rel (%p139_p2) target bundleno = 168 (0xa8), region = 32  ;;  %p163_p3 = scmp.lt.s32.totalorder (!%p139_p2), %s304_s16, 3 }
   0xb   : > { %v335_v0 = vld [vmem:[%s406_s1 + $0x18] sm:$0xff]  ;;  %v334_v1 = vld [vmem:[%s406_s1 + $0x10] sm:$0xff]  ;;  %s410_s16 = smov (!%p163_p3, %s304_s16), 3  ;;  %v333_v2 = vld [vmem:[%s406_s1 + $0x8] sm:$0xff]  ;;  %vm218_vm0 = vcmask 523264   ;;  %vm240_vm1 = vcmask 257024  }
   0xc   : > { %226 = vmatpush.bf16.msra.mxu0 %v335_v0  ;;  %s305_s21 = sshll.u32 %s410_s16, 2  ;;  %v332_v3 = vld [vmem:[%s406_s1] sm:$0xff] }
   0xd   : > { %s166_s26 = scalar_lea.vmem %s405_s0, %s305_s21  ;;  %v344_v5 = vld [vmem:[%s407_s2] ss:$0 sm:$0xff]  ;;  %s172_s4 = scalar_lea.vmem %s408_s3, %s305_s21 }
   0xe   : > { %v331_v4 = vld [vmem:[%s166_s26] sm:$0xff] }
  0x10   : > { %227 = vmatpush.bf16.msra.mxu0 %v334_v1 }
  0x14   : > { %228 = vmatpush.bf16.msra.mxu0 %v333_v2 }
  0x18   : > { %229 = vmatpush.bf16.msra.mxu0 %v332_v3 }
  0x1b   : > { %328 = vmatmul.msk.bf16.vlgmr.msra.gmra.mxu0 %vm218_vm0, %v331_v4 }
  0x98   : > { %v231_v6 = vpop.f32.mrf.mxu0 }
  0x99   : > { %v232_v7 = vadd.f32 %v344_v5, %v231_v6 }
  0x9b   : > { %v236_v8 = vmax.f32 %v232_v7, 0.0 }
  0x9d   : > { %v238_v9 = vpack.c.bf16 %v236_v8, %v236_v8 }
  0x9f   : > { %241 = vst.msk [vmem:[%s172_s4] sm:$0xf] %vm240_vm1, %v238_v9 }
  0xa0   : > { %v233_v10 = vpop.f32.mrf.mxu0 }
  0xa1   : > { %v234_v11 = vadd.f32 %v344_v5, %v233_v10 }
  0xa3   : > { %v237_v12 = vmax.f32 %v234_v11, 0.0 }
  0xa5   : > { %v239_v13 = vpack.c.bf16 %v237_v12, %v237_v12 }
  0xa7   : > { %242 = vst.msk [vmem:[%s172_s4 + $0x4] sm:$0xf] %vm240_vm1, %v239_v13 }
  0xa8 PF: > { %s13_s12 = sadd.s32 1, %s351_s12  }
  0xa9   : > { %p10_p4 = scmp.ge.s32.totalorder %s13_s12, 4  }
  0xab   :  { %12 = sbr.rel (!%p10_p4) target bundleno = 1 (0x1), region = 62 }

// kernel: vqae2_forward.9
= control target key start
LH: loop header
LB: loop body
LE: loop exit
PB: predicated region body
PF: predicated region fallthrough
CT: control target
= control target key end

     0   :  { %s589_s21 = smov 0   ;;  %s655_s0 = inlined_call_operand.vmem [shape: bf16[32,32], index: 0, kind: input, shape index: {}]   ;;  %s656_s1 = inlined_call_operand.vmem [shape: bf16[32,32], index: 1, kind: input, shape index: {}]   ;;  %s657_s2 = inlined_call_operand.vmem [shape: f32[1,32], index: 2, kind: input, shape index: {}]   ;;  %s658_s3 = inlined_call_operand.vmem [shape: bf16[32,128], index: 3, kind: input, shape index: {}]   ;;  %s659_s4 = inlined_call_operand.vmem [shape: f32[1,128], index: 4, kind: input, shape index: {}]   ;;  %s660_s5 = inlined_call_operand.vmem [shape: f32[33,128], index: 5, kind: input, shape index: {}]   ;;  %s661_s6 = inlined_call_operand.vmem [shape: f32[32,34], index: 6, kind: output, shape index: {}]  }
   0x1 LB: > { %s487_s22 = sadd.s32 4294967295, %s551_s21   ;;  %p491_p0 = scmp.ge.s32.totalorder %s551_s21, 1  ;;  %s551_s21 = sphi %s589_s21, %s16_s21  }
   0x2   : > { %p213_p1 = scmp.lt.s32.totalorder %s551_s21, 3 }
   0x4   : > { %p214_p2 = pnand %p491_p0, %p213_p1 }
   0x5   : > { %s492_s25 = sshll.u32 (!%p214_p2), %s487_s22, 1 }
   0x6   : > { %217 = sbr.rel (%p214_p2) target bundleno = 910 (0x38e), region = 44  ;;  %p244_p3 = scmp.lt.s32.totalorder (!%p214_p2), %s492_s25, 3 }
   0xb   : > { %v526_v0 = vld [vmem:[%s656_s1 + $0x8] sm:$0xff]  ;;  %v525_v1 = vld [vmem:[%s656_s1] sm:$0xff]  ;;  %s663_s25 = smov (!%p244_p3, %s492_s25), 3  ;;  %vm283_vm0 = vcmask 261120   ;;  %v347_v18 = vlaneseq  ;;  %v390_v29 = vld [vmem:[%s660_s5 + $0x18] sm:$0xff]  ;;  %v553_v47 = vmov 1.0  }
   0xc   : > { %293 = vmatpush.bf16.msra.mxu0 %v526_v0  ;;  %s493_s28 = sshll.u32 %s663_s25, 2  ;;  %v528_v3 = vld [vmem:[%s658_s3 + $0x8] sm:$0xff]  ;;  %v527_v4 = vld [vmem:[%s658_s3] sm:$0xff]  ;;  %v389_v30 = vld [vmem:[%s660_s5 + $0x10] sm:$0xff]  ;;  %vm425_vm7 = vcmask 269312   ;;  %vm428_vm8 = vcmask 277768  }
   0xd   : > { %s247_s7 = scalar_lea.vmem %s655_s0, %s493_s28  ;;  %327 = vmatpush.bf16.msra.mxu1 %v528_v3  ;;  %v543_v6 = vld [vmem:[%s657_s2] ss:$0 sm:$0xff]  ;;  %v348_v19 = vand.u32 127, %v347_v18  ;;  %v388_v31 = vld [vmem:[%s660_s5 + $0x8] sm:$0xff]  ;;  %s495_s28 = sshll.u32 %s663_s25, 3 }
   0xe   : > { %v524_v2 = vld [vmem:[%s247_s7] sm:$0xff]  ;;  %s253_s7 = scalar_lea.vmem %s661_s6, %s495_s28 }
   0xf   : > { %v544_v11 = vld [vmem:[%s659_s4] ss:$0 sm:$0xff] }
  0x10   : > { %294 = vmatpush.bf16.msra.mxu0 %v525_v1  ;;  %v391_v28 = vld [vmem:[%s660_s5 + $0x20] sm:$0x1] }
  0x11   : > { %328 = vmatpush.bf16.msra.mxu1 %v527_v4  ;;  %403 = vmatpush.xpose.msra.mxu2 %v391_v28  ;;  %v387_v40 = vld [vmem:[%s660_s5] sm:$0xff] }
  0x12   : > { %529 = vmatpush.xpose.msra.mxu3 %v391_v28 }
  0x13   : > { %508 = vmatmul.msk.bf16.vlgmr.msra.gmra.mxu0 %vm283_vm0, %v524_v2 }
  0x15   : > { %404 = vmatpush.xpose.msra.mxu2 %v390_v29 }
  0x16   : > { %530 = vmatpush.xpose.msra.mxu3 %v390_v29 }
  0x19   : > { %405 = vmatpush.xpose.msra.mxu2 %v389_v30 }
  0x1a   : > { %531 = vmatpush.xpose.msra.mxu3 %v389_v30 }
  0x1d   : > { %406 = vmatpush.xpose.msra.mxu2 %v388_v31 }
  0x1e   : > { %532 = vmatpush.xpose.msra.mxu3 %v388_v31 }
  0x21   : > { %407 = vmatpush.xpose.msra.mxu2 %v387_v40 }
  0x22   : > { %533 = vmatpush.xpose.msra.mxu3 %v387_v40 }
  0x90   : > { %v296_v5 = vpop.f32.mrf.mxu0 }
  0x91   : > { %v619_v8 = vadd.f32 %v543_v6, %v296_v5 }
  0x98   : > { %v298_v7 = vpop.f32.mrf.mxu0 }
  0x99   : > { %v621_v9 = vadd.f32 %v543_v6, %v298_v7 }
  0x9b   : > { %v301_v10 = vpack.c.bf16 %v621_v9, %v619_v8 }
  0x9d   : > { %517 = vmatmul.msk.bf16.vlgmr.msra.gmra.mxu1 %vm283_vm0, %v301_v10 }
 0x11a   : > { %v330_v12 = vpop.f32.mrf.mxu1 }
 0x11b   : > { %v336_v13 = vmul.f32 2.0, %v330_v12 }
 0x11d   : > { %v341_v14 = vsub.f32 %v544_v11, %v336_v13 }
 0x11f   : > { %343 = vmin.xlane.f32.xlu0 %v341_v14 }
 0x122   : > { %v332_v15 = vpop.f32.mrf.mxu1 }
 0x123   : > { %v337_v16 = vmul.f32 2.0, %v332_v15 }
 0x125   : > { %v342_v17 = vsub.f32 %v544_v11, %v337_v16 }
 0x127   : > { %345 = vmin.xlane.f32.xlu0 %v342_v17 }
 0x192   : > { %v344_v20 = vpop.xlane.xlu0 %343 }
 0x193   : > { %vm349_vm1 = vcmp.eq.f32.partialorder %v341_v14, %v344_v20 }
 0x194   : > { %v351_v21 = vsel %vm349_vm1, %v348_v19, 128 }
 0x195   : > { %v354_v22 = vshra.s32 %v351_v21, 16  ;;  %v353_v32 = vand.u32 65535, %v351_v21 }
 0x197   : > { %v356_v23 = vcvt.s32.f32 %v354_v22  ;;  %v355_v34 = vcvt.s32.f32 %v353_v32 }
 0x199   : > { %357 = vmin.xlane.f32.xlu1 %v356_v23 }
 0x19a   : > { %v346_v24 = vpop.xlane.xlu0 %345 }
 0x19b   : > { %vm350_vm2 = vcmp.eq.f32.partialorder %v342_v17, %v346_v24 }
 0x19c   : > { %v352_v25 = vsel %vm350_vm2, %v348_v19, 128 }
 0x19d   : > { %v368_v26 = vshra.s32 %v352_v25, 16  ;;  %v367_v36 = vand.u32 65535, %v352_v25 }
 0x19f   : > { %v370_v27 = vcvt.s32.f32 %v368_v26  ;;  %v369_v38 = vcvt.s32.f32 %v367_v36 }
 0x1a1   : > { %371 = vmin.xlane.f32.xlu1 %v370_v27 }
 0x20c   : > { %v358_v33 = vpop.xlane.xlu1 %357 }
 0x20d   : > { %vm359_vm3 = vcmp.eq.f32.partialorder %v356_v23, %v358_v33  ;;  %v364_v41 = vcvt.f32.s32 %v358_v33 }
 0x20e   : > { %v360_v35 = vsel %vm359_vm3, %v355_v34, inf }
 0x20f   : > { %361 = vmin.xlane.f32.xlu2 %v360_v35  ;;  %v365_v43 = vshll.u32 %v364_v41, 16 }
 0x214   : > { %v372_v37 = vpop.xlane.xlu1 %371 }
 0x215   : > { %vm373_vm4 = vcmp.eq.f32.partialorder %v370_v27, %v372_v37  ;;  %v378_v46 = vcvt.f32.s32 %v372_v37 }
 0x216   : > { %v374_v39 = vsel %vm373_vm4, %v369_v38, inf }
 0x217   : > { %375 = vmin.xlane.f32.xlu2 %v374_v39  ;;  %v379_v49 = vshll.u32 %v378_v46, 16 }
 0x282   : > { %v362_v42 = vpop.xlane.xlu2 %361 }
 0x283   : > { %v363_v44 = vcvt.f32.s32 %v362_v42 }
 0x285   : > { %v366_v45 = vadd.s32 %v365_v43, %v363_v44 }
 0x287   : > { %vm381_vm5 = vcmp.eq.s32.totalorder %v348_v19, %v366_v45 }
 0x288   : > { %520 = vmatmul.msk.f32.vlgmr.msra.gmra.mxu2 %vm381_vm5, %v553_v47 }
 0x28a   : > { %v376_v48 = vpop.xlane.xlu2 %375 }
 0x28b   : > { %v377_v50 = vcvt.f32.s32 %v376_v48 }
 0x28d   : > { %v380_v51 = vadd.s32 %v379_v49, %v377_v50 }
 0x28f   : > { %vm382_vm6 = vcmp.eq.s32.totalorder %v348_v19, %v380_v51 }
 0x290   : > { %521 = vmatmul.msk.f32.vlgmr.msra.gmra.mxu3 %vm382_vm6, %v553_v47 }
 0x30b   : > { %v409_v52 = vpop.f32.mrf.mxu2 }
 0x30c   : > { %v415_v53 = vsub.f32 %v409_v52, %v619_v8  ;;  %426 = vst.msk [vmem:[%s253_s7] sm:$0xff] %vm425_vm7, %v409_v52 }
 0x30e   : > { %v417_v54 = vmul.f32 %v415_v53, %v415_v53 }
 0x310   : > { %v419_v55 = vsel %vm283_vm0, %v417_v54, 0.0 }
 0x311   : > { %420 = vadd.xlane.f32.xlu0 %v419_v55 }
 0x313   : > { %v412_v56 = vpop.f32.mrf.mxu3 }
 0x314   : > { %v416_v57 = vsub.f32 %v412_v56, %v621_v9  ;;  %427 = vst.msk [vmem:[%s253_s7 + $0x8] sm:$0xff] %vm425_vm7, %v412_v56 }
 0x316   : > { %v418_v58 = vmul.f32 %v416_v57, %v416_v57 }
 0x318   : > { %v422_v59 = vsel %vm283_vm0, %v418_v58, 0.0 }
 0x319   : > { %423 = vadd.xlane.f32.xlu1 %v422_v59 }
 0x384   : > { %v421_v60 = vpop.xlane.xlu0 %420 }
 0x385   : > { %429 = vst.msk [vmem:[%s253_s7] sm:$0xff] %vm428_vm8, %v421_v60 }
 0x38c   : > { %v424_v61 = vpop.xlane.xlu1 %423 }
 0x38d   : > { %430 = vst.msk [vmem:[%s253_s7 + $0x8] sm:$0xff] %vm428_vm8, %v424_v61 }
 0x38e PF: > { %s16_s21 = sadd.s32 1, %s551_s21  }
 0x38f   : > { %p13_p4 = scmp.ge.s32.totalorder %s16_s21, 4  }
 0x391   :  { %15 = sbr.rel (!%p13_p4) target bundleno = 1 (0x1), region = 74 }

// kernel: vqae2_forward.10
= control target key start
LH: loop header
LB: loop body
LE: loop exit
PB: predicated region body
PF: predicated region fallthrough
CT: control target
= control target key end

     0   :  { %s349_s12 = smov 0   ;;  %s375_s0 = inlined_call_operand.vmem [shape: bf16[32,32], index: 0, kind: input, shape index: {}]   ;;  %s376_s1 = inlined_call_operand.vmem [shape: bf16[32,128], index: 1, kind: input, shape index: {}]   ;;  %s377_s2 = inlined_call_operand.vmem [shape: f32[1,128], index: 2, kind: input, shape index: {}]   ;;  %s378_s3 = inlined_call_operand.vmem [shape: bf16[32,128], index: 3, kind: output, shape index: {}]  }
   0x1 LB: > { %s280_s13 = sadd.s32 4294967295, %s327_s12   ;;  %p284_p0 = scmp.ge.s32.totalorder %s327_s12, 1  ;;  %s327_s12 = sphi %s349_s12, %s13_s12  }
   0x2   : > { %p138_p1 = scmp.lt.s32.totalorder %s327_s12, 3 }
   0x4   : > { %p139_p2 = pnand %p284_p0, %p138_p1 }
   0x5   : > { %s285_s16 = sshll.u32 (!%p139_p2), %s280_s13, 1 }
   0x6   : > { %142 = sbr.rel (%p139_p2) target bundleno = 158 (0x9e), region = 32  ;;  %p163_p3 = scmp.lt.s32.totalorder (!%p139_p2), %s285_s16, 3 }
   0xb   : > { %v306_v0 = vld [vmem:[%s376_s1 + $0x8] sm:$0xff]  ;;  %v305_v1 = vld [vmem:[%s376_s1] sm:$0xff]  ;;  %s380_s16 = smov (!%p163_p3, %s285_s16), 3  ;;  %vm202_vm0 = vcmask 261120  }
   0xc   : > { %212 = vmatpush.bf16.msra.mxu0 %v306_v0  ;;  %s286_s19 = sshll.u32 %s380_s16, 2  ;;  %v320_v4 = vld [vmem:[%s377_s2] ss:$0 sm:$0xff] }
   0xd   : > { %s166_s22 = scalar_lea.vmem %s375_s0, %s286_s19  ;;  %s172_s27 = scalar_lea.vmem %s378_s3, %s286_s19 }
   0xe   : > { %v304_v2 = vld [vmem:[%s166_s22] sm:$0xff] }
  0x10   : > { %213 = vmatpush.bf16.msra.mxu0 %v305_v1 }
  0x13   : > { %301 = vmatmul.msk.bf16.vlgmr.msra.gmra.mxu0 %vm202_vm0, %v304_v2 }
  0x90   : > { %v215_v3 = vpop.f32.mrf.mxu0 }
  0x91   : > { %v216_v6 = vadd.f32 %v320_v4, %v215_v3 }
  0x98   : > { %v217_v5 = vpop.f32.mrf.mxu0 }
  0x99   : > { %v218_v7 = vadd.f32 %v320_v4, %v217_v5 }
  0x9b   : > { %v310_v8 = vpack.c.bf16 %v218_v7, %v216_v6 }
  0x9d   : > { %311 = vst [vmem:[%s172_s27] sm:$0xff] %v310_v8  }
  0x9e PF: > { %s13_s12 = sadd.s32 1, %s327_s12  }
  0x9f   : > { %p10_p4 = scmp.ge.s32.totalorder %s13_s12, 4  }
  0xa1   :  { %12 = sbr.rel (!%p10_p4) target bundleno = 1 (0x1), region = 62 }

// kernel: vqae2_forward.12
= control target key start
LH: loop header
LB: loop body
LE: loop exit
PB: predicated region body
PF: predicated region fallthrough
CT: control target
= control target key end

     0   :  { %s1732_s0 = inlined_call_operand.vmem [shape: bf16[32,32], index: 0, kind: input, shape index: {}]   ;;  %s1733_s1 = inlined_call_operand.vmem [shape: bf16[32,32], index: 1, kind: input, shape index: {}]   ;;  %s1734_s2 = inlined_call_operand.vmem [shape: bf16[32,32], index: 2, kind: input, shape index: {}]   ;;  %s1735_s3 = inlined_call_operand.vmem [shape: bf16[32,32], index: 3, kind: input, shape index: {}]   ;;  %s1736_s4 = inlined_call_operand.vmem [shape: bf16[32,32], index: 4, kind: input, shape index: {}]   ;;  %s1737_s5 = inlined_call_operand.vmem [shape: bf16[32,32], index: 5, kind: input, shape index: {}]   ;;  %s1738_s6 = inlined_call_operand.vmem [shape: bf16[32,32], index: 6, kind: input, shape index: {}]   ;;  %s1739_s7 = inlined_call_operand.vmem [shape: bf16[32,32], index: 7, kind: input, shape index: {}]   ;;  %s1740_s8 = inlined_call_operand.vmem [shape: bf16[32,32], index: 8, kind: input, shape index: {}]   ;;  %s1741_s9 = inlined_call_operand.vmem [shape: bf16[32,128], index: 9, kind: input, shape index: {}]   ;;  %s1742_s10 = inlined_call_operand.vmem [shape: bf16[32,128], index: 10, kind: input, shape index: {}]   ;;  %s1743_s11 = inlined_call_operand.vmem [shape: bf16[32,128], index: 11, kind: input, shape index: {}]   ;;  %s1744_s12 = inlined_call_operand.vmem [shape: bf16[32,128], index: 12, kind: input, shape index: {}]   ;;  %s1745_s13 = inlined_call_operand.vmem [shape: bf16[32,128], index: 13, kind: input, shape index: {}]   ;;  %s1746_s14 = inlined_call_operand.vmem [shape: bf16[32,128], index: 14, kind: input, shape index: {}]   ;;  %s1747_s15 = inlined_call_operand.vmem [shape: bf16[32,128], index: 15, kind: input, shape index: {}]   ;;  %s1748_s16 = inlined_call_operand.vmem [shape: bf16[32,128], index: 16, kind: input, shape index: {}]   ;;  %s1749_s17 = inlined_call_operand.vmem [shape: bf16[32,128], index: 17, kind: input, shape index: {}]   ;;  %s1750_s18 = inlined_call_operand.vmem [shape: f32[1,128], index: 18, kind: input, shape index: {}]   ;;  %s1751_s19 = inlined_call_operand.vmem [shape: bf16[32,128], index: 19, kind: output, shape index: {}]  }
   0x1   :  { %1752 = sst [smem:[#allocation2_spill]] %s1732_s0  ;;  %s1613_s0 = smov 0  }
   0x2   :  { %1753 = sst [smem:[#allocation3_spill]] %s1733_s1 }
   0x3   :  { %1754 = sst [smem:[#allocation4_spill]] %s1734_s2 }
   0x4   :  { %1755 = sst [smem:[#allocation5_spill]] %s1735_s3 }
   0x5   :  { %1756 = sst [smem:[#allocation6_spill]] %s1741_s9 }
   0x6   :  { %1757 = sst [smem:[#allocation7_spill]] %s1742_s10 }
   0x7   :  { %1758 = sst [smem:[#allocation8_spill]] %s1743_s11 }
   0x8 LB: > { %s1320_s30 = sadd.s32 4294967295, %s1511_s0   ;;  %p1324_p0 = scmp.ge.s32.totalorder %s1511_s0, 1  ;;  %s1511_s0 = sphi %s1613_s0, %s29_s0  }
   0x9   : > { %p626_p1 = scmp.lt.s32.totalorder %s1511_s0, 3 }
   0xb   : > { %p627_p2 = pnand %p1324_p0, %p626_p1 }
   0xc   : > { %s1759_s10 = sld [smem:[#allocation7_spill]] (!%p627_p2)  ;;  %s1325_s24 = sshll.u32 (!%p627_p2), %s1320_s30, 1 }
   0xd   : > { %630 = sbr.rel (%p627_p2) target bundleno = 199 (0xc7), region = 96  ;;  %s1760_s9 = sld [smem:[#allocation6_spill]] (!%p627_p2) }
   0xe   : > { %s1761_s11 = sld [smem:[#allocation8_spill]] (!%p627_p2)  ;;  %p723_p3 = scmp.lt.s32.totalorder (!%p627_p2), %s1325_s24, 3 }
   0xf   : > { %s1762_s28 = sld [smem:[#allocation3_spill]] (!%p627_p2) }
  0x10   : > { %s1763_s30 = sld [smem:[#allocation2_spill]] (!%p627_p2) }
  0x11   : > { %s1764_s27 = sld [smem:[#allocation4_spill]] (!%p627_p2) }
  0x12   : > { %v1469_v0 = vld [vmem:[%s1759_s10 + $0x8] sm:$0xff]  ;;  %v1468_v4 = vld [vmem:[%s1759_s10] sm:$0xff]  ;;  %s1767_s24 = smov (!%p723_p3, %s1325_s24), 3  ;;  %vm812_vm0 = vcmask 261120   ;;  %s1765_s20 = sld [smem:[#allocation5_spill]] }
  0x13   : > { %v1466_v1 = vld [vmem:[%s1760_s9 + $0x8] sm:$0xff]  ;;  %822 = vmatpush.bf16.msra.mxu0 %v1469_v0  ;;  %v1465_v5 = vld [vmem:[%s1760_s9] sm:$0xff]  ;;  %s1651_s3 = sshll.u32 %s1767_s24, 2 }
  0x14   : > { %v1472_v2 = vld [vmem:[%s1761_s11 + $0x8] sm:$0xff]  ;;  %856 = vmatpush.bf16.msra.mxu1 %v1466_v1  ;;  %v1471_v6 = vld [vmem:[%s1761_s11] sm:$0xff]  ;;  %s768_s11 = scalar_lea.vmem %s1739_s7, %s1651_s3  ;;  %s774_s23 = scalar_lea.vmem %s1740_s8, %s1651_s3 }
  0x15   : > { %v1475_v3 = vld [vmem:[%s1744_s12 + $0x8] sm:$0xff]  ;;  %896 = vmatpush.bf16.msra.mxu2 %v1472_v2  ;;  %v1474_v7 = vld [vmem:[%s1744_s12] sm:$0xff]  ;;  %s732_s29 = scalar_lea.vmem %s1762_s28, %s1651_s3 }
  0x16   : > { %938 = vmatpush.bf16.msra.mxu3 %v1475_v3  ;;  %v1478_v8 = vld [vmem:[%s1745_s13 + $0x8] sm:$0xff]  ;;  %s726_s1 = scalar_lea.vmem %s1763_s30, %s1651_s3  ;;  %v1477_v10 = vld [vmem:[%s1745_s13] sm:$0xff]  ;;  %s756_s30 = scalar_lea.vmem %s1737_s5, %s1651_s3 }
  0x17   : > { %v1484_v9 = vld [vmem:[%s1747_s15 + $0x8] sm:$0xff]  ;;  %823 = vmatpush.bf16.msra.mxu0 %v1468_v4  ;;  %v1467_v12 = vld [vmem:[%s732_s29] sm:$0xff]  ;;  %s738_s28 = scalar_lea.vmem %s1764_s27, %s1651_s3  ;;  %s762_s29 = scalar_lea.vmem %s1738_s6, %s1651_s3 }
  0x18   : > { %857 = vmatpush.bf16.msra.mxu1 %v1465_v5  ;;  %v1487_v11 = vld [vmem:[%s1748_s16 + $0x8] sm:$0xff]  ;;  %v1464_v13 = vld [vmem:[%s726_s1] sm:$0xff]  ;;  %s744_s21 = scalar_lea.vmem %s1765_s20, %s1651_s3  ;;  %s780_s20 = scalar_lea.vmem %s1751_s19, %s1651_s3 }
  0x19   : > { %897 = vmatpush.bf16.msra.mxu2 %v1471_v6  ;;  %v1481_v14 = vld [vmem:[%s1746_s14 + $0x8] sm:$0xff]  ;;  %v1470_v15 = vld [vmem:[%s738_s28] sm:$0xff]  ;;  %s750_s28 = scalar_lea.vmem %s1736_s4, %s1651_s3 }
  0x1a   : > { %939 = vmatpush.bf16.msra.mxu3 %v1474_v7  ;;  %v1473_v16 = vld [vmem:[%s744_s21] sm:$0xff]  ;;  %1357 = vmatmul.msk.bf16.vlgmr.msra.gmra.mxu0 %vm812_vm0, %v1467_v12  ;;  %v1490_v18 = vld [vmem:[%s1749_s17 + $0x8] sm:$0xff] }
  0x1b   : > { %980 = vmatpush.bf16.msrb.mxu0 %v1478_v8  ;;  %v1483_v17 = vld [vmem:[%s1747_s15] sm:$0xff]  ;;  %1370 = vmatmul.msk.bf16.vlgmr.msra.gmra.mxu1 %vm812_vm0, %v1464_v13 }
  0x1c   : > { %1383 = vmatmul.msk.bf16.vlgmr.msra.gmra.mxu2 %vm812_vm0, %v1470_v15  ;;  %1022 = vmatpush.bf16.msrb.mxu1 %v1481_v14  ;;  %v1486_v19 = vld [vmem:[%s1748_s16] sm:$0xff] }
  0x1d   : > { %1064 = vmatpush.bf16.msrb.mxu2 %v1484_v9  ;;  %1396 = vmatmul.msk.bf16.vlgmr.msra.gmra.mxu3 %vm812_vm0, %v1473_v16  ;;  %v1480_v20 = vld [vmem:[%s1746_s14] sm:$0xff] }
  0x1e   : > { %1106 = vmatpush.bf16.msrb.mxu3 %v1487_v11  ;;  %v1489_v21 = vld [vmem:[%s1749_s17] sm:$0xff] }
  0x1f   : > { %981 = vmatpush.bf16.msrb.mxu0 %v1477_v10  ;;  %v1476_v22 = vld [vmem:[%s750_s28] sm:$0xff] }
  0x20   : > { %1023 = vmatpush.bf16.msrb.mxu1 %v1480_v20  ;;  %v1479_v23 = vld [vmem:[%s756_s30] sm:$0xff] }
  0x21   : > { %1065 = vmatpush.bf16.msrb.mxu2 %v1483_v17  ;;  %v1482_v24 = vld [vmem:[%s762_s29] sm:$0xff] }
  0x22   : > { %1107 = vmatpush.bf16.msrb.mxu3 %v1486_v19  ;;  %v1485_v25 = vld [vmem:[%s768_s11] sm:$0xff] }
  0x23   : > { %1148 = vmatpush.bf16.msra.mxu0 %v1490_v18  ;;  %v1488_v26 = vld [vmem:[%s774_s23] sm:$0xff] }
  0x24   : > { %v1504_v59 = vld [vmem:[%s1750_s18] ss:$0 sm:$0xff] }
  0x27   : > { %1149 = vmatpush.bf16.msra.mxu0 %v1489_v21 }
  0x2a   : > { %1409 = vmatmul.msk.bf16.vlgmr.msrb.gmra.mxu0 %vm812_vm0, %v1476_v22 }
  0x2b   : > { %1422 = vmatmul.msk.bf16.vlgmr.msrb.gmra.mxu1 %vm812_vm0, %v1479_v23 }
  0x2c   : > { %1435 = vmatmul.msk.bf16.vlgmr.msrb.gmra.mxu2 %vm812_vm0, %v1482_v24 }
  0x2d   : > { %1448 = vmatmul.msk.bf16.vlgmr.msrb.gmra.mxu3 %vm812_vm0, %v1485_v25 }
  0x3a   : > { %1461 = vmatmul.msk.bf16.vlgmr.msra.gmra.mxu0 %vm812_vm0, %v1488_v26 }
  0x97   : > { %v825_v27 = vpop.f32.mrf.mxu0 }
  0x98   : > { %v859_v28 = vpop.f32.mrf.mxu1 }
  0x99   : > { %v860_v36 = vadd.f32 %v859_v28, %v825_v27 }
  0x9f   : > { %v899_v29 = vpop.f32.mrf.mxu2  ;;  %v827_v31 = vpop.f32.mrf.mxu0 }
  0xa0   : > { %v941_v30 = vpop.f32.mrf.mxu3  ;;  %v861_v32 = vpop.f32.mrf.mxu1  ;;  %v904_v38 = vadd.f32 %v899_v29, %v860_v36 }
  0xa1   : > { %v862_v39 = vadd.f32 %v861_v32, %v827_v31 }
  0xa2   : > { %v946_v43 = vadd.f32 %v941_v30, %v904_v38 }
  0xa7   : > { %v901_v33 = vpop.f32.mrf.mxu2  ;;  %v983_v34 = vpop.f32.mrf.mxu0 }
  0xa8   : > { %v943_v35 = vpop.f32.mrf.mxu3  ;;  %v1025_v37 = vpop.f32.mrf.mxu1  ;;  %v905_v40 = vadd.f32 %v901_v33, %v862_v39  ;;  %v988_v45 = vadd.f32 %v983_v34, %v946_v43 }
  0xaa   : > { %v947_v44 = vadd.f32 %v943_v35, %v905_v40  ;;  %v1030_v49 = vadd.f32 %v1025_v37, %v988_v45 }
  0xaf   : > { %v1067_v41 = vpop.f32.mrf.mxu2  ;;  %v985_v42 = vpop.f32.mrf.mxu0 }
  0xb0   : > { %v1109_v46 = vpop.f32.mrf.mxu3  ;;  %v989_v47 = vadd.f32 %v985_v42, %v947_v44  ;;  %v1027_v48 = vpop.f32.mrf.mxu1  ;;  %v1072_v52 = vadd.f32 %v1067_v41, %v1030_v49 }
  0xb2   : > { %v1031_v53 = vadd.f32 %v1027_v48, %v989_v47  ;;  %v1114_v55 = vadd.f32 %v1109_v46, %v1072_v52 }
  0xb7   : > { %v1069_v50 = vpop.f32.mrf.mxu2  ;;  %v1151_v51 = vpop.f32.mrf.mxu0 }
  0xb8   : > { %v1073_v54 = vadd.f32 %v1069_v50, %v1031_v53  ;;  %v1111_v56 = vpop.f32.mrf.mxu3  ;;  %v1156_v58 = vadd.f32 %v1151_v51, %v1114_v55 }
  0xba   : > { %v1115_v57 = vadd.f32 %v1111_v56, %v1073_v54  ;;  %v1162_v62 = vadd.f32 %v1504_v59, %v1156_v58 }
  0xbf   : > { %v1153_v60 = vpop.f32.mrf.mxu0 }
  0xc0   : > { %v1157_v61 = vadd.f32 %v1153_v60, %v1115_v57 }
  0xc2   : > { %v1163_v63 = vadd.f32 %v1504_v59, %v1157_v61 }
  0xc4   : > { %v1494_v0 = vpack.c.bf16 %v1163_v63, %v1162_v62 }
  0xc6   : > { %1495 = vst [vmem:[%s780_s20] sm:$0xff] %v1494_v0  }
  0xc7 PF: > { %s29_s0 = sadd.s32 1, %s1511_s0  }
  0xc8   : > { %p26_p4 = scmp.ge.s32.totalorder %s29_s0, 4  }
  0xca   :  { %28 = sbr.rel (!%p26_p4) target bundleno = 8 (0x8), region = 150 }

// kernel: vqae2_forward.13
= control target key start
LH: loop header
LB: loop body
LE: loop exit
PB: predicated region body
PF: predicated region fallthrough
CT: control target
= control target key end

     0   :  { %s643_s18 = smov 0   ;;  %s708_s0 = inlined_call_operand.vmem [shape: bf16[128,32], index: 0, kind: input, shape index: {}]   ;;  %s709_s1 = inlined_call_operand.vmem [shape: bf16[128,32], index: 1, kind: input, shape index: {}]   ;;  %s710_s2 = inlined_call_operand.vmem [shape: bf16[32,48], index: 2, kind: input, shape index: {}]   ;;  %s711_s3 = inlined_call_operand.vmem [shape: bf16[32,48], index: 3, kind: input, shape index: {}]   ;;  %s712_s4 = inlined_call_operand.vmem [shape: f32[1,48], index: 4, kind: input, shape index: {}]   ;;  %s713_s5 = inlined_call_operand.vmem [shape: f32[128,48], index: 5, kind: output, shape index: {}]  }
   0x1 LB: > { %s511_s19 = sadd.s32 4294967295, %s611_s18   ;;  %p515_p0 = scmp.ge.s32.totalorder %s611_s18, 1  ;;  %s611_s18 = sphi %s643_s18, %s15_s18  }
   0x2   : > { %p199_p1 = scmp.lt.s32.totalorder %s611_s18, 3 }
   0x4   : > { %p200_p2 = pnand %p515_p0, %p199_p1 }
   0x5   : > { %s516_s24 = sshll.u32 (!%p200_p2), %s511_s19, 3 }
   0x6   : > { %203 = sbr.rel (%p200_p2) target bundleno = 181 (0xb5), region = 40  ;;  %p233_p3 = scmp.lt.s32.totalorder (!%p200_p2), %s516_s24, 15 }
   0xb   : > { %v591_v0 = vld [vmem:[%s711_s3 + $0x8] sm:$0xff]  ;;  %v590_v2 = vld [vmem:[%s711_s3] sm:$0xff]  ;;  %s715_s24 = smov (!%p233_p3, %s516_s24), 15  ;;  %vm307_vm0 = vcmask 261120   ;;  %vm434_vm1 = vcmask 392192  }
   0xc   : > { %v585_v1 = vld [vmem:[%s710_s2 + $0x8] sm:$0xff]  ;;  %326 = vmatpush.bf16.msra.mxu0 %v591_v0  ;;  %592 = vmatpush.bf16.msra.mxu2 %v591_v0  ;;  %v584_v3 = vld [vmem:[%s710_s2] sm:$0xff]  ;;  %s517_s29 = sshll.u32 %s715_s24, 2  ;;  %s521_s11 = sshll.u32 %s715_s24, 3 }
   0xd   : > { %399 = vmatpush.bf16.msra.mxu1 %v585_v1  ;;  %594 = vmatpush.bf16.msra.mxu3 %v585_v1  ;;  %s242_s7 = scalar_lea.vmem %s709_s1, %s517_s29  ;;  %s236_s10 = scalar_lea.vmem %s708_s0, %s517_s29  ;;  %v604_v13 = vld [vmem:[%s712_s4] ss:$0 sm:$0xff] }
   0xe   : > { %v586_v4 = vld [vmem:[%s242_s7] sm:$0xff]  ;;  %v588_v5 = vld [vmem:[%s242_s7 + $0x10] sm:$0xff]  ;;  %v587_v8 = vld [vmem:[%s242_s7 + $0x8] sm:$0xff]  ;;  %s687_s16 = scalar_lea.vmem %s713_s5, %s521_s11 }
   0xf   : > { %v580_v6 = vld [vmem:[%s236_s10] sm:$0xff]  ;;  %v582_v7 = vld [vmem:[%s236_s10 + $0x10] sm:$0xff]  ;;  %v589_v9 = vld [vmem:[%s242_s7 + $0x18] sm:$0xff] }
  0x10   : > { %327 = vmatpush.bf16.msra.mxu0 %v590_v2  ;;  %593 = vmatpush.bf16.msra.mxu2 %v590_v2  ;;  %v581_v10 = vld [vmem:[%s236_s10 + $0x8] sm:$0xff]  ;;  %v583_v11 = vld [vmem:[%s236_s10 + $0x18] sm:$0xff] }
  0x11   : > { %400 = vmatpush.bf16.msra.mxu1 %v584_v3  ;;  %595 = vmatpush.bf16.msra.mxu3 %v584_v3 }
  0x13   : > { %546 = vmatmul.msk.bf16.vlgmr.msra.gmra.mxu0 %vm307_vm0, %v586_v4  ;;  %548 = vmatmul.msk.bf16.vlgmr.msra.gmra.mxu2 %vm307_vm0, %v588_v5 }
  0x14   : > { %574 = vmatmul.msk.bf16.vlgmr.msra.gmra.mxu1 %vm307_vm0, %v580_v6  ;;  %576 = vmatmul.msk.bf16.vlgmr.msra.gmra.mxu3 %vm307_vm0, %v582_v7 }
  0x23   : > { %547 = vmatmul.msk.bf16.gmra.mxu0 %vm307_vm0, %v587_v8  ;;  %549 = vmatmul.msk.bf16.gmra.mxu2 %vm307_vm0, %v589_v9 }
  0x24   : > { %575 = vmatmul.msk.bf16.gmra.mxu1 %vm307_vm0, %v581_v10  ;;  %577 = vmatmul.msk.bf16.gmra.mxu3 %vm307_vm0, %v583_v11 }
  0x90   : > { %v329_v12 = vpop.f32.mrf.mxu0 }
  0x91   : > { %v402_v14 = vpop.f32.mrf.mxu1 }
  0x92   : > { %v403_v15 = vadd.f32 %v402_v14, %v329_v12 }
  0x94   : > { %v426_v16 = vadd.f32 %v604_v13, %v403_v15 }
  0x96   : > { %435 = vst.msk [vmem:[%s687_s16] sm:$0xff] %vm434_vm1, %v426_v16  ;;  %v339_v17 = vpop.f32.mrf.mxu2 }
  0x97   : > { %v412_v18 = vpop.f32.mrf.mxu3 }
  0x98   : > { %v413_v19 = vadd.f32 %v412_v18, %v339_v17  ;;  %v331_v20 = vpop.f32.mrf.mxu0 }
  0x99   : > { %v404_v21 = vpop.f32.mrf.mxu1 }
  0x9a   : > { %v430_v22 = vadd.f32 %v604_v13, %v413_v19  ;;  %v405_v23 = vadd.f32 %v404_v21, %v331_v20 }
  0x9c   : > { %439 = vst.msk [vmem:[%s687_s16 + $0x20] sm:$0xff] %vm434_vm1, %v430_v22  ;;  %v427_v24 = vadd.f32 %v604_v13, %v405_v23 }
  0x9e   : > { %436 = vst.msk [vmem:[%s687_s16 + $0x8] sm:$0xff] %vm434_vm1, %v427_v24  ;;  %v341_v25 = vpop.f32.mrf.mxu2 }
  0x9f   : > { %v414_v26 = vpop.f32.mrf.mxu3 }
  0xa0   : > { %v415_v27 = vadd.f32 %v414_v26, %v341_v25  ;;  %v334_v28 = vpop.f32.mrf.mxu0 }
  0xa1   : > { %v407_v29 = vpop.f32.mrf.mxu1 }
  0xa2   : > { %v431_v30 = vadd.f32 %v604_v13, %v415_v27  ;;  %v408_v31 = vadd.f32 %v407_v29, %v334_v28 }
  0xa4   : > { %440 = vst.msk [vmem:[%s687_s16 + $0x28] sm:$0xff] %vm434_vm1, %v431_v30  ;;  %v428_v32 = vadd.f32 %v604_v13, %v408_v31 }
  0xa6   : > { %437 = vst.msk [vmem:[%s687_s16 + $0x10] sm:$0xff] %vm434_vm1, %v428_v32  ;;  %v344_v33 = vpop.f32.mrf.mxu2 }
  0xa7   : > { %v417_v34 = vpop.f32.mrf.mxu3 }
  0xa8   : > { %v418_v35 = vadd.f32 %v417_v34, %v344_v33  ;;  %v336_v36 = vpop.f32.mrf.mxu0 }
  0xa9   : > { %v409_v37 = vpop.f32.mrf.mxu1 }
  0xaa   : > { %v432_v38 = vadd.f32 %v604_v13, %v418_v35  ;;  %v410_v39 = vadd.f32 %v409_v37, %v336_v36 }
  0xac   : > { %441 = vst.msk [vmem:[%s687_s16 + $0x30] sm:$0xff] %vm434_vm1, %v432_v38  ;;  %v429_v40 = vadd.f32 %v604_v13, %v410_v39 }
  0xae   : > { %438 = vst.msk [vmem:[%s687_s16 + $0x18] sm:$0xff] %vm434_vm1, %v429_v40  ;;  %v346_v41 = vpop.f32.mrf.mxu2 }
  0xaf   : > { %v419_v42 = vpop.f32.mrf.mxu3 }
  0xb0   : > { %v420_v43 = vadd.f32 %v419_v42, %v346_v41 }
  0xb2   : > { %v433_v44 = vadd.f32 %v604_v13, %v420_v43 }
  0xb4   : > { %442 = vst.msk [vmem:[%s687_s16 + $0x38] sm:$0xff] %vm434_vm1, %v433_v44 }
  0xb5 PF: > { %s15_s18 = sadd.s32 1, %s611_s18  }
  0xb6   : > { %p12_p4 = scmp.ge.s32.totalorder %s15_s18, 4  }
  0xb8   :  { %14 = sbr.rel (!%p12_p4) target bundleno = 1 (0x1), region = 73 }

// kernel: vqae2_forward.11
= control target key start
LH: loop header
LB: loop body
LE: loop exit
PB: predicated region body
PF: predicated region fallthrough
CT: control target
= control target key end

     0   :  { %s1107_s27 = smov 0   ;;  %s1291_s0 = inlined_call_operand.vmem [shape: bf16[128,32], index: 0, kind: input, shape index: {}]   ;;  %s1292_s1 = inlined_call_operand.vmem [shape: bf16[128,16], index: 1, kind: input, shape index: {}]   ;;  %s1293_s2 = inlined_call_operand.vmem [shape: bf16[32,32], index: 2, kind: input, shape index: {}]   ;;  %s1294_s3 = inlined_call_operand.vmem [shape: bf16[16,32], index: 3, kind: input, shape index: {}]   ;;  %s1295_s4 = inlined_call_operand.vmem [shape: f32[1,32], index: 4, kind: input, shape index: {}]   ;;  %s1296_s5 = inlined_call_operand.vmem [shape: bf16[32,128], index: 5, kind: input, shape index: {}]   ;;  %s1297_s6 = inlined_call_operand.vmem [shape: f32[1,128], index: 6, kind: input, shape index: {}]   ;;  %s1298_s7 = inlined_call_operand.vmem [shape: f32[33,128], index: 7, kind: input, shape index: {}]   ;;  %s1299_s8 = inlined_call_operand.vmem [shape: f32[128,34], index: 8, kind: output, shape index: {}]  }
   0x1 LB: > { %s931_s28 = sadd.s32 4294967295, %s1059_s27   ;;  %p935_p0 = scmp.ge.s32.totalorder %s1059_s27, 1  ;;  %s1059_s27 = sphi %s1107_s27, %s18_s27  }
   0x2   : > { %p274_p1 = scmp.lt.s32.totalorder %s1059_s27, 3 }
   0x4   : > { %p275_p2 = pnand %p935_p0, %p274_p1 }
   0x5   : > { %s936_s11 = sshll.u32 (!%p275_p2), %s931_s28, 3 }
   0x6   : > { %278 = sbr.rel (%p275_p2) target bundleno = 1054 (0x41e), region = 52  ;;  %p314_p3 = scmp.lt.s32.totalorder (!%p275_p2), %s936_s11, 15 }
   0xb   : > { %v1029_v0 = vld [vmem:[%s1293_s2 + $0x8] sm:$0xff]  ;;  %v1034_v1 = vld [vmem:[%s1294_s3] sm:$0xff]  ;;  %s1301_s11 = smov (!%p314_p3, %s936_s11), 15  ;;  %vm380_vm0 = vcmask 130048   ;;  %vm454_vm1 = vcmask 261120  }
   0xc   : > { %473 = vmatpush.bf16.msra.mxu1 %v1029_v0  ;;  %400 = vmatpush.bf16.msra.mxu0 %v1034_v1  ;;  %v1028_v2 = vld [vmem:[%s1293_s2] sm:$0xff]  ;;  %s937_s14 = sshll.u32 %s1301_s11, 2  ;;  %v1036_v11 = vld [vmem:[%s1296_s5 + $0x8] sm:$0xff]  ;;  %s941_s19 = sshll.u32 %s1301_s11, 3 }
   0xd   : > { %s323_s17 = scalar_lea.vmem %s1292_s1, %s937_s14  ;;  %s317_s20 = scalar_lea.vmem %s1291_s0, %s937_s14  ;;  %546 = vmatpush.bf16.msra.mxu2 %v1036_v11  ;;  %v1035_v12 = vld [vmem:[%s1296_s5] sm:$0xff]  ;;  %v605_v11 = vlaneseq }
   0xe   : > { %v1030_v3 = vld [vmem:[%s323_s17] sm:$0xff]  ;;  %v1031_v5 = vld [vmem:[%s323_s17 + $0x8] sm:$0xff]  ;;  %v1032_v7 = vld [vmem:[%s323_s17 + $0x10] sm:$0xff]  ;;  %s1238_s22 = scalar_lea.vmem %s1299_s8, %s941_s19 }
   0xf   : > { %v1024_v4 = vld [vmem:[%s317_s20] sm:$0xff]  ;;  %962 = vmatmul.msk.bf16.vlgmr.msra.gmra.mxu0 %vm380_vm0, %v1030_v3  ;;  %v1025_v6 = vld [vmem:[%s317_s20 + $0x8] sm:$0xff]  ;;  %v1026_v8 = vld [vmem:[%s317_s20 + $0x10] sm:$0xff] }
  0x10   : > { %474 = vmatpush.bf16.msra.mxu1 %v1028_v2  ;;  %v1033_v9 = vld [vmem:[%s323_s17 + $0x18] sm:$0xff]  ;;  %v1051_v16 = vld [vmem:[%s1295_s4] ss:$0 sm:$0xff] }
  0x11   : > { %v1027_v10 = vld [vmem:[%s317_s20 + $0x18] sm:$0xff]  ;;  %547 = vmatpush.bf16.msra.mxu2 %v1035_v12  ;;  %v1052_v53 = vld [vmem:[%s1297_s6] ss:$0 sm:$0xff]  ;;  %v1181_v12 = vand.u32 127, %v605_v11 }
  0x13   : > { %990 = vmatmul.msk.bf16.vlgmr.msra.gmra.mxu1 %vm454_vm1, %v1024_v4 }
  0x1f   : > { %963 = vmatmul.msk.bf16.gmra.mxu0 %vm380_vm0, %v1031_v5 }
  0x23   : > { %991 = vmatmul.msk.bf16.gmra.mxu1 %vm454_vm1, %v1025_v6 }
  0x2f   : > { %964 = vmatmul.msk.bf16.gmra.mxu0 %vm380_vm0, %v1032_v7 }
  0x33   : > { %992 = vmatmul.msk.bf16.gmra.mxu1 %vm454_vm1, %v1026_v8 }
  0x3f   : > { %965 = vmatmul.msk.bf16.gmra.mxu0 %vm380_vm0, %v1033_v9 }
  0x43   : > { %993 = vmatmul.msk.bf16.gmra.mxu1 %vm454_vm1, %v1027_v10 }
  0x8c   : > { %v402_v13 = vpop.f32.mrf.mxu0 }
  0x90   : > { %v476_v14 = vpop.f32.mrf.mxu1 }
  0x91   : > { %v477_v15 = vadd.f32 %v476_v14, %v402_v13 }
  0x93   : > { %v1150_v20 = vadd.f32 %v1051_v16, %v477_v15 }
  0x94   : > { %v404_v17 = vpop.f32.mrf.mxu0 }
  0x98   : > { %v478_v18 = vpop.f32.mrf.mxu1 }
  0x99   : > { %v479_v19 = vadd.f32 %v478_v18, %v404_v17 }
  0x9b   : > { %v1152_v21 = vadd.f32 %v1051_v16, %v479_v19 }
  0x9c   : > { %v407_v23 = vpop.f32.mrf.mxu0 }
  0x9d   : > { %v508_v22 = vpack.c.bf16 %v1152_v21, %v1150_v20 }
  0x9f   : > { %1002 = vmatmul.msk.bf16.vlgmr.msra.gmra.mxu2 %vm454_vm1, %v508_v22 }
  0xa0   : > { %v481_v24 = vpop.f32.mrf.mxu1 }
  0xa1   : > { %v482_v25 = vadd.f32 %v481_v24, %v407_v23 }
  0xa3   : > { %v1157_v28 = vadd.f32 %v1051_v16, %v482_v25 }
  0xa4   : > { %v409_v26 = vpop.f32.mrf.mxu0 }
  0xa8   : > { %v483_v27 = vpop.f32.mrf.mxu1 }
  0xa9   : > { %v484_v29 = vadd.f32 %v483_v27, %v409_v26 }
  0xab   : > { %v1159_v30 = vadd.f32 %v1051_v16, %v484_v29 }
  0xac   : > { %v412_v32 = vpop.f32.mrf.mxu0 }
  0xad   : > { %v509_v31 = vpack.c.bf16 %v1159_v30, %v1157_v28 }
  0xaf   : > { %1003 = vmatmul.msk.bf16.gmra.mxu2 %vm454_vm1, %v509_v31 }
  0xb0   : > { %v486_v33 = vpop.f32.mrf.mxu1 }
  0xb1   : > { %v487_v34 = vadd.f32 %v486_v33, %v412_v32 }
  0xb3   : > { %v1164_v37 = vadd.f32 %v1051_v16, %v487_v34 }
  0xb4   : > { %v414_v35 = vpop.f32.mrf.mxu0 }
  0xb8   : > { %v488_v36 = vpop.f32.mrf.mxu1 }
  0xb9   : > { %v489_v38 = vadd.f32 %v488_v36, %v414_v35 }
  0xbb   : > { %v1166_v39 = vadd.f32 %v1051_v16, %v489_v38 }
  0xbc   : > { %v417_v41 = vpop.f32.mrf.mxu0 }
  0xbd   : > { %v510_v40 = vpack.c.bf16 %v1166_v39, %v1164_v37 }
  0xbf   : > { %1004 = vmatmul.msk.bf16.gmra.mxu2 %vm454_vm1, %v510_v40 }
  0xc0   : > { %v491_v42 = vpop.f32.mrf.mxu1 }
  0xc1   : > { %v492_v43 = vadd.f32 %v491_v42, %v417_v41 }
  0xc3   : > { %v1171_v46 = vadd.f32 %v1051_v16, %v492_v43 }
  0xc4   : > { %v419_v44 = vpop.f32.mrf.mxu0 }
  0xc8   : > { %v493_v45 = vpop.f32.mrf.mxu1 }
  0xc9   : > { %v494_v47 = vadd.f32 %v493_v45, %v419_v44 }
  0xcb   : > { %v1173_v48 = vadd.f32 %v1051_v16, %v494_v47 }
  0xcd   : > { %v511_v49 = vpack.c.bf16 %v1173_v48, %v1171_v46 }
  0xcf   : > { %1005 = vmatmul.msk.bf16.gmra.mxu2 %vm454_vm1, %v511_v49 }
 0x122   : > { %v549_v50 = vpop.f32.mrf.mxu2 }
 0x123   : > { %v570_v6 = vmul.f32 2.0, %v549_v50 }
 0x125   : > { %v581_v9 = vsub.f32 %v1052_v53, %v570_v6  ;;  %v761_v6 = vld [vmem:[%s1298_s7 + $0x10] sm:$0xff] }
 0x12a   : > { %v551_v51 = vpop.f32.mrf.mxu2 }
 0x12b   : > { %v571_v52 = vmul.f32 2.0, %v551_v51 }
 0x12d   : > { %v582_v54 = vsub.f32 %v1052_v53, %v571_v52 }
 0x12f   : > { %591 = vmin.xlane.f32.xlu0 %v582_v54 }
 0x132   : > { %v554_v55 = vpop.f32.mrf.mxu2 }
 0x133   : > { %v572_v56 = vmul.f32 2.0, %v554_v55 }
 0x135   : > { %v583_v57 = vsub.f32 %v1052_v53, %v572_v56 }
 0x137   : > { %593 = vmin.xlane.f32.xlu0 %v583_v57 }
 0x13a   : > { %v556_v58 = vpop.f32.mrf.mxu2 }
 0x13b   : > { %v573_v59 = vmul.f32 2.0, %v556_v58 }
 0x13d   : > { %v584_v60 = vsub.f32 %v1052_v53, %v573_v59 }
 0x13f   : > { %595 = vmin.xlane.f32.xlu1 %v584_v60 }
 0x142   : > { %v559_v61 = vpop.f32.mrf.mxu2 }
 0x143   : > { %v574_v62 = vmul.f32 2.0, %v559_v61 }
 0x145   : > { %v585_v63 = vsub.f32 %v1052_v53, %v574_v62 }
 0x147   : > { %597 = vmin.xlane.f32.xlu1 %v585_v63 }
 0x14a   : > { %v561_v0 = vpop.f32.mrf.mxu2 }
 0x14b   : > { %v575_v1 = vmul.f32 2.0, %v561_v0 }
 0x14d   : > { %v586_v2 = vsub.f32 %v1052_v53, %v575_v1  ;;  %v763_v1 = vld [vmem:[%s1298_s7 + $0x20] sm:$0x1] }
 0x14e   : > { %1037 = vmatpush.xpose.msra.mxu3 %v763_v1  ;;  %775 = vmatpush.xpose.msrb.mxu0 %v763_v1 }
 0x14f   : > { %599 = vmin.xlane.f32.xlu2 %v586_v2 }
 0x152   : > { %v564_v3 = vpop.f32.mrf.mxu2 }
 0x153   : > { %v576_v4 = vmul.f32 2.0, %v564_v3  ;;  %v762_v3 = vld [vmem:[%s1298_s7 + $0x18] sm:$0xff] }
 0x154   : > { %1038 = vmatpush.xpose.msra.mxu3 %v762_v3  ;;  %776 = vmatpush.xpose.msrb.mxu0 %v762_v3 }
 0x155   : > { %v587_v5 = vsub.f32 %v1052_v53, %v576_v4 }
 0x157   : > { %601 = vmin.xlane.f32.xlu2 %v587_v5 }
 0x158   : > { %1039 = vmatpush.xpose.msra.mxu3 %v761_v6  ;;  %777 = vmatpush.xpose.msrb.mxu0 %v761_v6 }
 0x15a   : > { %v566_v7 = vpop.f32.mrf.mxu2 }
 0x15b   : > { %v577_v8 = vmul.f32 2.0, %v566_v7 }
 0x15d   : > { %v588_v10 = vsub.f32 %v1052_v53, %v577_v8 }
 0x15f   : > { %589 = vmin.xlane.f32.xlu2 %v581_v9  ;;  %603 = vmin.xlane.f32.xlu1 %v588_v10 }
 0x1a2   : > { %v592_v13 = vpop.xlane.xlu0 %591 }
 0x1a3   : > { %vm608_vm2 = vcmp.eq.f32.partialorder %v582_v54, %v592_v13 }
 0x1a4   : > { %v616_v14 = vsel %vm608_vm2, %v1181_v12, 128 }
 0x1a5   : > { %v638_v15 = vshra.s32 %v616_v14, 16  ;;  %v637_v49 = vand.u32 65535, %v616_v14 }
 0x1a7   : > { %v640_v16 = vcvt.s32.f32 %v638_v15  ;;  %v639_v52 = vcvt.s32.f32 %v637_v49 }
 0x1a9   : > { %641 = vmin.xlane.f32.xlu0 %v640_v16 }
 0x1aa   : > { %v594_v17 = vpop.xlane.xlu0 %593 }
 0x1ab   : > { %vm609_vm3 = vcmp.eq.f32.partialorder %v583_v57, %v594_v17 }
 0x1ac   : > { %v617_v18 = vsel %vm609_vm3, %v1181_v12, 128 }
 0x1ad   : > { %v652_v19 = vshra.s32 %v617_v18, 16  ;;  %v651_v55 = vand.u32 65535, %v617_v18 }
 0x1af   : > { %v654_v22 = vcvt.s32.f32 %v652_v19  ;;  %v653_v58 = vcvt.s32.f32 %v651_v55 }
 0x1b1   : > { %655 = vmin.xlane.f32.xlu0 %v654_v22 }
 0x1b2   : > { %v596_v23 = vpop.xlane.xlu1 %595 }
 0x1b3   : > { %vm610_vm4 = vcmp.eq.f32.partialorder %v584_v60, %v596_v23 }
 0x1b4   : > { %v618_v24 = vsel %vm610_vm4, %v1181_v12, 128 }
 0x1b5   : > { %v666_v25 = vshra.s32 %v618_v24, 16  ;;  %v665_v61 = vand.u32 65535, %v618_v24  ;;  %v759_v24 = vld [vmem:[%s1298_s7] sm:$0xff] }
 0x1b7   : > { %v668_v26 = vcvt.s32.f32 %v666_v25 }
 0x1b9   : > { %669 = vmin.xlane.f32.xlu1 %v668_v26 }
 0x1ba   : > { %v598_v27 = vpop.xlane.xlu1 %597 }
 0x1bb   : > { %vm611_vm5 = vcmp.eq.f32.partialorder %v585_v63, %v598_v27  ;;  %v667_v63 = vcvt.s32.f32 %v665_v61 }
 0x1bc   : > { %v619_v29 = vsel %vm611_vm5, %v1181_v12, 128 }
 0x1bd   : > { %v680_v31 = vshra.s32 %v619_v29, 16 }
 0x1bf   : > { %v682_v32 = vcvt.s32.f32 %v680_v31 }
 0x1c1   : > { %683 = vmin.xlane.f32.xlu2 %v682_v32 }
 0x1c2   : > { %v600_v33 = vpop.xlane.xlu2 %599 }
 0x1c3   : > { %vm612_vm6 = vcmp.eq.f32.partialorder %v586_v2, %v600_v33  ;;  %v679_v2 = vand.u32 65535, %v619_v29 }
 0x1c4   : > { %v620_v34 = vsel %vm612_vm6, %v1181_v12, 128 }
 0x1c5   : > { %v694_v35 = vshra.s32 %v620_v34, 16  ;;  %v693_v8 = vand.u32 65535, %v620_v34  ;;  %v1061_v34 = vmov 1.0  }
 0x1c7   : > { %v696_v36 = vcvt.s32.f32 %v694_v35  ;;  %v695_v11 = vcvt.s32.f32 %v693_v8 }
 0x1c9   : > { %697 = vmin.xlane.f32.xlu0 %v696_v36 }
 0x1ca   : > { %v602_v38 = vpop.xlane.xlu2 %601 }
 0x1cb   : > { %vm613_vm7 = vcmp.eq.f32.partialorder %v587_v5, %v602_v38  ;;  %v681_v5 = vcvt.s32.f32 %v679_v2 }
 0x1cc   : > { %v621_v40 = vsel %vm613_vm7, %v1181_v12, 128 }
 0x1cd   : > { %v708_v41 = vshra.s32 %v621_v40, 16  ;;  %v707_v14 = vand.u32 65535, %v621_v40 }
 0x1cf   : > { %v710_v42 = vcvt.s32.f32 %v708_v41 }
 0x1d1   : > { %711 = vmin.xlane.f32.xlu1 %v710_v42 }
 0x1d2   : > { %v604_v43 = vpop.xlane.xlu1 %603  ;;  %v590_v50 = vpop.xlane.xlu2 %589 }
 0x1d3   : > { %vm614_vm8 = vcmp.eq.f32.partialorder %v588_v10, %v604_v43  ;;  %vm607_vm9 = vcmp.eq.f32.partialorder %v581_v9, %v590_v50  ;;  %v760_v9 = vld [vmem:[%s1298_s7 + $0x8] sm:$0xff] }
 0x1d4   : > { %v622_v44 = vsel %vm614_vm8, %v1181_v12, 128  ;;  %v1191_v53 = vsel %vm607_vm9, %v1181_v12, 128  ;;  %1040 = vmatpush.xpose.msra.mxu3 %v760_v9  ;;  %778 = vmatpush.xpose.msrb.mxu0 %v760_v9 }
 0x1d5   : > { %v722_v45 = vshra.s32 %v622_v44, 16  ;;  %v624_v56 = vshra.s32 %v1191_v53, 16  ;;  %v721_v18 = vand.u32 65535, %v622_v44 }
 0x1d7   : > { %v724_v47 = vcvt.s32.f32 %v722_v45  ;;  %v1196_v59 = vcvt.s32.f32 %v624_v56 }
 0x1d8   : > { %1041 = vmatpush.xpose.msra.mxu3 %v759_v24  ;;  %779 = vmatpush.xpose.msrb.mxu0 %v759_v24 }
 0x1d9   : > { %725 = vmin.xlane.f32.xlu0 %v724_v47 }
 0x21c   : > { %v642_v51 = vpop.xlane.xlu0 %641 }
 0x21d   : > { %vm643_vm10 = vcmp.eq.f32.partialorder %v640_v16, %v642_v51  ;;  %v709_v16 = vcvt.s32.f32 %v707_v14  ;;  %v648_v25 = vcvt.f32.s32 %v642_v51 }
 0x21e   : > { %v644_v54 = vsel %vm643_vm10, %v639_v52, inf }
 0x21f   : > { %645 = vmin.xlane.f32.xlu2 %v644_v54  ;;  %v649_v27 = vshll.u32 %v648_v25, 16 }
 0x224   : > { %v1194_v57 = vpop.xlane.xlu0 %655 }
 0x225   : > { %vm657_vm11 = vcmp.eq.f32.partialorder %v654_v22, %v1194_v57  ;;  %v723_v22 = vcvt.s32.f32 %v721_v18  ;;  %v662_v33 = vcvt.f32.s32 %v1194_v57 }
 0x226   : > { %v658_v60 = vsel %vm657_vm11, %v653_v58, inf  ;;  %vm845_vm11 = vcmask 269312  }
 0x227   : > { %627 = vmin.xlane.f32.xlu2 %v1196_v59  ;;  %659 = vmin.xlane.f32.xlu1 %v658_v60  ;;  %v663_v40 = vshll.u32 %v662_v33, 16 }
 0x22c   : > { %v1200_v62 = vpop.xlane.xlu1 %669 }
 0x22d   : > { %vm671_vm12 = vcmp.eq.f32.partialorder %v668_v26, %v1200_v62  ;;  %v676_v44 = vcvt.f32.s32 %v1200_v62 }
 0x22e   : > { %v672_v0 = vsel %vm671_vm12, %v667_v63, inf  ;;  %vm854_vm12 = vcmask 277768  }
 0x22f   : > { %673 = vmin.xlane.f32.xlu0 %v672_v0 }
 0x234   : > { %v1209_v4 = vpop.xlane.xlu2 %683 }
 0x235   : > { %vm685_vm13 = vcmp.eq.f32.partialorder %v682_v32, %v1209_v4  ;;  %v623_v32 = vand.u32 65535, %v1191_v53  ;;  %v690_v51 = vcvt.f32.s32 %v1209_v4 }
 0x236   : > { %v686_v7 = vsel %vm685_vm13, %v681_v5, inf }
 0x237   : > { %687 = vmin.xlane.f32.xlu1 %v686_v7  ;;  %v625_v38 = vcvt.s32.f32 %v623_v32  ;;  %v691_v53 = vshll.u32 %v690_v51, 16 }
 0x23c   : > { %v698_v10 = vpop.xlane.xlu0 %697 }
 0x23d   : > { %vm699_vm14 = vcmp.eq.f32.partialorder %v696_v36, %v698_v10  ;;  %v704_v56 = vcvt.f32.s32 %v698_v10 }
 0x23e   : > { %v700_v13 = vsel %vm699_vm14, %v695_v11, inf }
 0x23f   : > { %701 = vmin.xlane.f32.xlu2 %v700_v13  ;;  %v705_v58 = vshll.u32 %v704_v56, 16 }
 0x244   : > { %v712_v15 = vpop.xlane.xlu1 %711 }
 0x245   : > { %vm713_vm15 = vcmp.eq.f32.partialorder %v710_v42, %v712_v15  ;;  %v718_v61 = vcvt.f32.s32 %v712_v15 }
 0x246   : > { %v714_v17 = vsel %vm713_vm15, %v709_v16, inf }
 0x247   : > { %715 = vmin.xlane.f32.xlu0 %v714_v17  ;;  %v719_v63 = vshll.u32 %v718_v61, 16 }
 0x24c   : > { %v726_v19 = vpop.xlane.xlu0 %725 }
 0x24d   : > { %vm727_vm0 = vcmp.eq.f32.partialorder %v724_v47, %v726_v19  ;;  %v677_v47 = vshll.u32 %v676_v44, 16  ;;  %v732_v2 = vcvt.f32.s32 %v726_v19 }
 0x24e   : > { %v728_v23 = vsel %vm727_vm0, %v723_v22, inf }
 0x24f   : > { %729 = vmin.xlane.f32.xlu1 %v728_v23  ;;  %v733_v4 = vshll.u32 %v732_v2, 16 }
 0x292   : > { %v646_v26 = vpop.xlane.xlu2 %645 }
 0x293   : > { %v647_v29 = vcvt.f32.s32 %v646_v26 }
 0x295   : > { %v650_v31 = vadd.s32 %v649_v27, %v647_v29 }
 0x297   : > { %vm736_vm2 = vcmp.eq.s32.totalorder %v1181_v12, %v650_v31 }
 0x298   : > { %1015 = vmatmul.msk.f32.vlgmr.msra.gmra.mxu3 %vm736_vm2, %v1061_v34 }
 0x29a   : > { %v628_v35 = vpop.xlane.xlu2 %627  ;;  %v660_v36 = vpop.xlane.xlu1 %659 }
 0x29b   : > { %v661_v41 = vcvt.f32.s32 %v660_v36  ;;  %vm629_vm3 = vcmp.eq.f32.partialorder %v1196_v59, %v628_v35  ;;  %v634_v7 = vcvt.f32.s32 %v628_v35 }
 0x29c   : > { %v630_v42 = vsel %vm629_vm3, %v625_v38, inf }
 0x29d   : > { %v664_v43 = vadd.s32 %v663_v40, %v661_v41  ;;  %631 = vmin.xlane.f32.xlu2 %v630_v42  ;;  %v635_v9 = vshll.u32 %v634_v7, 16 }
 0x29f   : > { %vm737_vm4 = vcmp.eq.s32.totalorder %v1181_v12, %v664_v43 }
 0x2a0   : > { %1016 = vmatmul.msk.f32.gmra.mxu3 %vm737_vm4, %v1061_v34 }
 0x2a2   : > { %v674_v45 = vpop.xlane.xlu0 %673 }
 0x2a3   : > { %v675_v49 = vcvt.f32.s32 %v674_v45 }
 0x2a5   : > { %v678_v50 = vadd.s32 %v677_v47, %v675_v49 }
 0x2a7   : > { %vm738_vm5 = vcmp.eq.s32.totalorder %v1181_v12, %v678_v50 }
 0x2a8   : > { %1017 = vmatmul.msk.f32.gmra.mxu3 %vm738_vm5, %v1061_v34 }
 0x2aa   : > { %v688_v52 = vpop.xlane.xlu1 %687 }
 0x2ab   : > { %v689_v54 = vcvt.f32.s32 %v688_v52 }
 0x2ad   : > { %v692_v55 = vadd.s32 %v691_v53, %v689_v54 }
 0x2af   : > { %vm739_vm6 = vcmp.eq.s32.totalorder %v1181_v12, %v692_v55 }
 0x2b0   : > { %1018 = vmatmul.msk.f32.gmra.mxu3 %vm739_vm6, %v1061_v34 }
 0x2b2   : > { %v702_v57 = vpop.xlane.xlu2 %701 }
 0x2b3   : > { %v703_v59 = vcvt.f32.s32 %v702_v57 }
 0x2b5   : > { %v706_v60 = vadd.s32 %v705_v58, %v703_v59 }
 0x2b7   : > { %vm740_vm7 = vcmp.eq.s32.totalorder %v1181_v12, %v706_v60 }
 0x2b8   : > { %1019 = vmatmul.msk.f32.gmra.mxu3 %vm740_vm7, %v1061_v34 }
 0x2ba   : > { %v716_v62 = vpop.xlane.xlu0 %715 }
 0x2bb   : > { %v717_v0 = vcvt.f32.s32 %v716_v62 }
 0x2bd   : > { %v720_v1 = vadd.s32 %v719_v63, %v717_v0 }
 0x2bf   : > { %vm741_vm8 = vcmp.eq.s32.totalorder %v1181_v12, %v720_v1 }
 0x2c0   : > { %1020 = vmatmul.msk.f32.gmra.mxu3 %vm741_vm8, %v1061_v34 }
 0x2c2   : > { %v730_v3 = vpop.xlane.xlu1 %729 }
 0x2c3   : > { %v731_v5 = vcvt.f32.s32 %v730_v3 }
 0x2c5   : > { %v734_v6 = vadd.s32 %v733_v4, %v731_v5 }
 0x2c7   : > { %vm742_vm9 = vcmp.eq.s32.totalorder %v1181_v12, %v734_v6 }
 0x2c8   : > { %1021 = vmatmul.msk.f32.gmra.mxu3 %vm742_vm9, %v1061_v34 }
 0x310   : > { %v632_v8 = vpop.xlane.xlu2 %631 }
 0x311   : > { %v633_v10 = vcvt.f32.s32 %v632_v8 }
 0x313   : > { %v636_v11 = vadd.s32 %v635_v9, %v633_v10 }
 0x315   : > { %vm735_vm10 = vcmp.eq.s32.totalorder %v1181_v12, %v636_v11 }
 0x316   : > { %1014 = vmatmul.msk.f32.vlgmr.msrb.gmra.mxu0 %vm735_vm10, %v1061_v34 }
 0x31b   : > { %v784_v13 = vpop.f32.mrf.mxu3 }
 0x31c   : > { %v806_v14 = vsub.f32 %v784_v13, %v1152_v21  ;;  %847 = vst.msk [vmem:[%s1238_s22 + $0x8] sm:$0xff] %vm845_vm11, %v784_v13 }
 0x31e   : > { %v814_v15 = vmul.f32 %v806_v14, %v806_v14 }
 0x320   : > { %v824_v12 = vsel %vm454_vm1, %v814_v15, 0.0 }
 0x321   : > { %825 = vadd.xlane.f32.xlu1 %v824_v12 }
 0x323   : > { %v787_v16 = vpop.f32.mrf.mxu3 }
 0x324   : > { %v807_v17 = vsub.f32 %v787_v16, %v1157_v28  ;;  %848 = vst.msk [vmem:[%s1238_s22 + $0x10] sm:$0xff] %vm845_vm11, %v787_v16 }
 0x326   : > { %v815_v18 = vmul.f32 %v807_v17, %v807_v17 }
 0x328   : > { %v827_v19 = vsel %vm454_vm1, %v815_v18, 0.0 }
 0x329   : > { %828 = vadd.xlane.f32.xlu2 %v827_v19 }
 0x32b   : > { %v790_v22 = vpop.f32.mrf.mxu3 }
 0x32c   : > { %849 = vst.msk [vmem:[%s1238_s22 + $0x18] sm:$0xff] %vm845_vm11, %v790_v22 }
 0x333   : > { %v793_v21 = vpop.f32.mrf.mxu3 }
 0x334   : > { %v809_v23 = vsub.f32 %v793_v21, %v1164_v37  ;;  %850 = vst.msk [vmem:[%s1238_s22 + $0x20] sm:$0xff] %vm845_vm11, %v793_v21 }
 0x336   : > { %v817_v24 = vmul.f32 %v809_v23, %v809_v23 }
 0x338   : > { %v833_v25 = vsel %vm454_vm1, %v817_v24, 0.0 }
 0x339   : > { %834 = vadd.xlane.f32.xlu1 %v833_v25 }
 0x33b   : > { %v796_v28 = vpop.f32.mrf.mxu3 }
 0x33c   : > { %v810_v26 = vsub.f32 %v796_v28, %v1166_v39  ;;  %851 = vst.msk [vmem:[%s1238_s22 + $0x28] sm:$0xff] %vm845_vm11, %v796_v28 }
 0x33e   : > { %v818_v27 = vmul.f32 %v810_v26, %v810_v26 }
 0x340   : > { %v836_v29 = vsel %vm454_vm1, %v818_v27, 0.0 }
 0x341   : > { %837 = vadd.xlane.f32.xlu2 %v836_v29 }
 0x343   : > { %v799_v31 = vpop.f32.mrf.mxu3 }
 0x344   : > { %852 = vst.msk [vmem:[%s1238_s22 + $0x30] sm:$0xff] %vm845_vm11, %v799_v31 }
 0x34b   : > { %v802_v37 = vpop.f32.mrf.mxu3 }
 0x34c   : > { %v812_v32 = vsub.f32 %v802_v37, %v1173_v48  ;;  %853 = vst.msk [vmem:[%s1238_s22 + $0x38] sm:$0xff] %vm845_vm11, %v802_v37  ;;  %v808_v48 = vsub.f32 %v790_v22, %v1159_v30 }
 0x34e   : > { %v820_v33 = vmul.f32 %v812_v32, %v812_v32  ;;  %v816_v41 = vmul.f32 %v808_v48, %v808_v48 }
 0x350   : > { %v842_v39 = vsel %vm454_vm1, %v820_v33, 0.0  ;;  %v830_v43 = vsel %vm454_vm1, %v816_v41, 0.0 }
 0x351   : > { %843 = vadd.xlane.f32.xlu1 %v842_v39 }
 0x393   : > { %v781_v34 = vpop.f32.mrf.mxu0 }
 0x394   : > { %v805_v35 = vsub.f32 %v781_v34, %v1150_v20  ;;  %846 = vst.msk [vmem:[%s1238_s22] sm:$0xff] %vm845_vm11, %v781_v34  ;;  %v826_v36 = vpop.xlane.xlu1 %825  ;;  %v811_v20 = vsub.f32 %v799_v31, %v1171_v46 }
 0x395   : > { %856 = vst.msk [vmem:[%s1238_s22 + $0x8] sm:$0xff] %vm854_vm12, %v826_v36 }
 0x396   : > { %v813_v38 = vmul.f32 %v805_v35, %v805_v35  ;;  %v819_v44 = vmul.f32 %v811_v20, %v811_v20 }
 0x398   : > { %v821_v40 = vsel %vm454_vm1, %v813_v38, 0.0  ;;  %v839_v45 = vsel %vm454_vm1, %v819_v44, 0.0 }
 0x399   : > { %822 = vadd.xlane.f32.xlu0 %v821_v40 }
 0x39c   : > { %v829_v42 = vpop.xlane.xlu2 %828 }
 0x39d   : > { %857 = vst.msk [vmem:[%s1238_s22 + $0x10] sm:$0xff] %vm854_vm12, %v829_v42 }
 0x3a1   : > { %831 = vadd.xlane.f32.xlu0 %v830_v43 }
 0x3a9   : > { %840 = vadd.xlane.f32.xlu0 %v839_v45 }
 0x3ac   : > { %v835_v30 = vpop.xlane.xlu1 %834 }
 0x3ad   : > { %859 = vst.msk [vmem:[%s1238_s22 + $0x20] sm:$0xff] %vm854_vm12, %v835_v30 }
 0x3b4   : > { %v838_v47 = vpop.xlane.xlu2 %837 }
 0x3b5   : > { %860 = vst.msk [vmem:[%s1238_s22 + $0x28] sm:$0xff] %vm854_vm12, %v838_v47 }
 0x3c4   : > { %v844_v49 = vpop.xlane.xlu1 %843 }
 0x3c5   : > { %862 = vst.msk [vmem:[%s1238_s22 + $0x38] sm:$0xff] %vm854_vm12, %v844_v49 }
 0x40c   : > { %v823_v50 = vpop.xlane.xlu0 %822 }
 0x40d   : > { %855 = vst.msk [vmem:[%s1238_s22] sm:$0xff] %vm854_vm12, %v823_v50 }
 0x414   : > { %v832_v46 = vpop.xlane.xlu0 %831 }
 0x415   : > { %858 = vst.msk [vmem:[%s1238_s22 + $0x18] sm:$0xff] %vm854_vm12, %v832_v46 }
 0x41c   : > { %v841_v51 = vpop.xlane.xlu0 %840 }
 0x41d   : > { %861 = vst.msk [vmem:[%s1238_s22 + $0x30] sm:$0xff] %vm854_vm12, %v841_v51 }
 0x41e PF: > { %s18_s27 = sadd.s32 1, %s1059_s27  }
 0x41f   : > { %p15_p4 = scmp.ge.s32.totalorder %s18_s27, 4  }
 0x421   :  { %17 = sbr.rel (!%p15_p4) target bundleno = 1 (0x1), region = 85 }

</bundles_post_ra>
